<compile_context>
chip_gen: v7x
topology: tpu7x:2x2x1
jax: 0.10.0
libtpu: 0.0.40
codegen_flags: <defaults>
</compile_context>

<pallas_src>
import jax
import jax.numpy as jnp
from jax import lax
from jax.experimental import pallas as pl
from jax.experimental.pallas import tpu as pltpu


def gelu_kernel(x_ref, o_ref):
    x = x_ref[...]
    # Exact GELU (approximate='none'): x * (0.5 + 0.5 * erf(x / sqrt(2)))
    # (constants folded so only one mul+add surrounds the erf polynomial).
    inv_sqrt2 = jnp.float32(0.7071067811865476)
    half = jnp.float32(0.5)
    o_ref[...] = x * (half + half * lax.erf(x * inv_sqrt2))


def gelu_pallas(x):
    orig_shape = x.shape
    n = x.size
    SUB, LANE = 8, 128
    assert n % (SUB * LANE) == 0, "element count must be (8*128)-aligned"

    # (8, cols) slab: sublane dim = 8 (aligned), lane dim a multiple of 128.
    cols = n // SUB
    x2d = x.reshape(SUB, cols)

    # Pick an even number of large, equally sized steps: 4 preferred (even on
    # v7x's 2 TCs + pipeline overlap), else 2, else a single block. Each block
    # stays >=512 lanes wide so stores remain unmasked and lane-dense.
    steps = 1
    for s in (4, 2):
        if cols % (s * LANE) == 0 and (cols // s) >= 512:
            steps = s
            break
    lane_tile = cols // steps

    itemsize = jnp.dtype(x.dtype).itemsize
    out = pl.pallas_call(
        gelu_kernel,
        out_shape=jax.ShapeDtypeStruct((SUB, cols), x.dtype),
        grid_spec=pltpu.PrefetchScalarGridSpec(
            num_scalar_prefetch=0,
            grid=(steps,),
            in_specs=[pl.BlockSpec((SUB, lane_tile), lambda j: (0, j))],
            out_specs=pl.BlockSpec((SUB, lane_tile), lambda j: (0, j)),
        ),
        compiler_params=pltpu.CompilerParams(
            dimension_semantics=("parallel",)),
        cost_estimate=pl.CostEstimate(
            flops=10 * n,
            transcendentals=n,
            bytes_accessed=2 * n * itemsize,
        ),
    )(x2d)
    return out.reshape(orig_shape)


if __name__ == "__main__":
    key = jax.random.PRNGKey(0)
    # Shape implied by the module's forward: [1, 14, 14, 3072]
    x199 = jax.random.normal(key, (1, 14, 14, 3072), dtype=jnp.float32)

    y = gelu_pallas(x199)
    jax.block_until_ready(y)

    # sanity check against pure-JAX exact GELU
    ref = jax.nn.gelu(x199, approximate=False)
    assert y.shape == x199.shape and y.dtype == x199.dtype
    assert jnp.max(jnp.abs(y - ref)) < 1e-5

    print("KERNEL_OK")
</pallas_src>

<mosaic_0001>
module attributes {stable_mosaic.version = 11 : i64} {
  func.func @gelu_kernel(%arg0: i32, %arg1: memref<8x18816xf32, #tpu.memory_space<vmem>>, %arg2: memref<8x18816xf32, #tpu.memory_space<vmem>>) attributes {dimension_semantics = [#tpu.dimension_semantics<parallel>], iteration_bounds = array<i64: 4>, scalar_prefetch = 0 : i64, scratch_operands = 0 : i64, tpu.core_type = #tpu.core_type<tc>, window_params = [{transform_indices = @transform_0, window_bounds = array<i64: 8, 18816>}, {transform_indices = @transform_1, window_bounds = array<i64: 8, 18816>}]} {
    %c0 = arith.constant 0 : index
    %c0_0 = arith.constant 0 : index
    %0 = vector.load %arg1[%c0, %c0_0] : memref<8x18816xf32, #tpu.memory_space<vmem>>, vector<8x18816xf32>
    %cst = arith.constant 0.707106769 : f32
    %1 = vector.broadcast %cst : f32 to vector<8x18816xf32>
    %2 = arith.mulf %0, %1 : vector<8x18816xf32>
    %3 = math.erf %2 : vector<8x18816xf32>
    %cst_1 = arith.constant 5.000000e-01 : f32
    %4 = vector.broadcast %cst_1 : f32 to vector<8x18816xf32>
    %5 = arith.mulf %4, %3 : vector<8x18816xf32>
    %cst_2 = arith.constant 5.000000e-01 : f32
    %6 = vector.broadcast %cst_2 : f32 to vector<8x18816xf32>
    %7 = arith.addf %6, %5 : vector<8x18816xf32>
    %8 = arith.mulf %0, %7 : vector<8x18816xf32>
    %c0_3 = arith.constant 0 : index
    %c0_4 = arith.constant 0 : index
    %9 = vector.load %arg2[%c0_3, %c0_4] : memref<8x18816xf32, #tpu.memory_space<vmem>>, vector<8x18816xf32>
    tpu.vector_store %arg2[%c0_3, %c0_4], %8 {strides = array<i32>} : memref<8x18816xf32, #tpu.memory_space<vmem>>, vector<8x18816xf32>,
    return
  }
  func.func @transform_0(%arg0: i32) -> (i32, i32) {
    %c0_i32 = arith.constant 0 : i32
    %c0_i32_0 = arith.constant 0 : i32
    return %c0_i32, %arg0 : i32, i32
  }
  func.func @transform_1(%arg0: i32) -> (i32, i32) {
    %c0_i32 = arith.constant 0 : i32
    %c0_i32_0 = arith.constant 0 : i32
    return %c0_i32, %arg0 : i32, i32
  }
}

</mosaic_0001>

<bundles_post_ra>
// kernel: tpu_custom_call.1
= control target key start
LH: loop header
LB: loop body
LE: loop exit
PB: predicated region body
PF: predicated region fallthrough
CT: control target
= control target key end

     0   :  { %6 = vsyncpa [#allocation3], 0  ;;  %s2755_s0 = inlined_call_operand.hbm [shape: f32[8,75264], index: 0, kind: input, shape index: {}]   ;;  %s2756_s1 = inlined_call_operand.hbm [shape: f32[8,75264], index: 1, kind: output, shape index: {}]  }
   0x1   :  { %8 = vsyncpa [#allocation3 + $0x1], 0 }
   0x2   :  { %9 = vsyncpa [#allocation4], 0 }
   0x3   :  { %11 = vsyncpa [#allocation4 + $0x1], 0  ;;  %s1711_s6 = smov 0   ;;  %s1713_s7 = smov 0  }
   0x4   :  { %s1715_s8 = smov 0   ;;  %s1717_s9 = smov 0  }
   0x5 LB: > { %s1732_s10 = sadd.s32 4294967295, %s1697_s9   ;;  %s1249_s11 = sadd.s32 4294967294, %s1697_s9   ;;  %s1697_s9 = sphi %s1717_s9, %s2769_s9   ;;  %s1693_s8 = sphi %s1715_s8, %s2768_s8   ;;  %s1689_s7 = sphi %s1713_s7, %s2767_s7   ;;  %s1685_s6 = sphi %s1711_s6, %s2766_s6  }
   0x6   : > { %s1736_s12 = sadd.s32 1, %s1697_s9   ;;  %s24_s13 = sadd.s32 1, %s1693_s8 }
   0x7   : > { %s21_s14 = ssub.s32 %s1697_s9, %s1736_s12  ;;  %p31_p0 = scmp.ne.s32.totalorder %s1693_s8, %s1689_s7 }
   0x8   : > { %p22_p1 = scmp.eq.s32.totalorder %s21_s14, 0  ;;  %p32_p2 = scmp.eq.s32.totalorder %s1697_s9, 0 }
   0x9   : > { %p37_p3 = scmp.ne.s32.totalorder %s1689_s7, %s1685_s6  ;;  %p38_p4 = scmp.eq.s32.totalorder %s1732_s10, 0 }
   0xa   : > { %s1748_s15 = scalar_select %p22_p1, %s1693_s8, %s24_s13  }
   0xb   : > { %p33_p5 = por %p32_p2, %p31_p0  ;;  %p1750_p6 = por %p38_p4, %p37_p3 }
   0xc   : > { %p61_p7 = scmp.eq.s32.totalorder %s1732_s10, 3  ;;  %p67_p8 = scmp.eq.s32.totalorder %s1249_s11, 3 }
   0xd   : > { %p1273_p9 = scmp.lt.s32.totalorder %s1697_s9, 4  ;;  %s87_s19 = sand.u32 1, %s1693_s8  }
   0xe   : > { %p1756_p10 = por %p61_p7, %p31_p0  ;;  %p1760_p11 = por %p67_p8, %p37_p3 }
   0xf   : > { %s1257_s20 = smul.u32 18816, %s1697_s9  ;;  %p1771_p12 = pnand %p1273_p9, %p33_p5 }
  0x10   : > { %s2759_s17 = scalar_select %p1756_p10, 1, 0 }
  0x11   : > { %s2760_s18 = scalar_select %p1760_p11, 1, 0 }
  0x12   : > { %s1259_s21 = smul.u32 1176, %s87_s19  ;;  %s1769_s24 = scalar_lea.hbm %s2755_s0, %s1257_s20 }
  0x13   : > { %s88_s28 = scalar_lea.sflag [#allocation3], %s87_s19  ;;  %s1601_s29 = scalar_lea.hbm %s1769_s24, 18816 }
  0x14   : > { %s91_s26 = scalar_lea.vmem [#allocation2], %s1259_s21  ;;  %p1602_p1 = scmp.ne.s32.totalorder %s1769_s24, %s1601_s29 }
  0x15   : > { %s99_s27 = sshll.u32 %s91_s26, 4  ;;  %p1603_p2 = pneg %p1771_p12  ;;  %s1776_s27 = int_to_ptr.vmem [resolvable:$true] %s99_s27 }
  0x16   : > { %s1606_s3 = scalar_lea.hbm %s2755_s0, 75264  ;;  %p1607_p5 = scmp.lt.u32.totalorder %s1769_s24, %s2755_s0 }
  0x17   : > { %p1604_p3 = pnand %p1603_p2, %p1602_p1  ;;  %p1608_p7 = scmp.lt.u32.totalorder %s1606_s3, %s1601_s29 }
  0x18   : > { %p1610_p9 = scmp.lt.u32.totalorder %s1601_s29, %s1769_s24 }
  0x19   : > { %p1605_p4 = pneg %p1604_p3  ;;  %p1609_p8 = por %p1608_p7, %p1607_p5 }
  0x1b   : > { %p1611_p13 = por %p1610_p9, %p1609_p8 }
  0x1d   : > { %p1612_p0 = pnand %p1611_p13, %p1605_p4 }
  0x1f   : > { %1615 = shalt.err (!%p1612_p0)
}
  0x20   : > { %s1616_s11 = scalar_lea.vmem %s1776_s27, 18816  ;;  %s1699_s13 = smov [#allocation2]  }
  0x21   : > { %p1617_p1 = scmp.ne.s32.totalorder %s1776_s27, %s1616_s11  ;;  %s1621_s14 = sshll.u32 %s1699_s13, 4  ;;  %s1622_s14 = int_to_ptr.vmem [resolvable:$false] %s1621_s14 }
  0x22   : > { %s1623_s19 = scalar_lea.vmem %s1622_s14, 37632  ;;  %p1624_p10 = scmp.lt.s32.totalorder %s1776_s27, %s1622_s14 }
  0x23   : > { %p1619_p3 = pnand %p1617_p1, %p1603_p2  ;;  %p1625_p5 = scmp.lt.s32.totalorder %s1623_s19, %s1616_s11 }
  0x25   : > { %p1620_p11 = pneg %p1619_p3  ;;  %p1626_p7 = por %p1625_p5, %p1624_p10 }
  0x27   : > { %p1627_p8 = pnand %p1626_p7, %p1620_p11 }
  0x29   : > { %1630 = shalt.err (!%p1627_p8)
}
  0x2a   : > { %1268 = dma.hbm_to_vmem [thread:$0]  (!%p1771_p12), %s1769_s24, 18816, %s1776_s27, %s88_s28  }
  0x2b   : > { %p2762_p13 = scmp.lt.s32.totalorder %s1697_s9, 5  ;;  %p2763_p0 = scmp.ge.s32.totalorder %s1697_s9, 1 }
  0x2d   : > { %p105_p2 = pnand %p2763_p0, %p2762_p13 }
  0x2e   : > { %s1809_s20 = sand.u32 (!%p105_p2), 1, %s1689_s7  }
  0x2f   : > { %108 = sbr.rel (%p105_p2) target bundleno = 270 (0x10e), region = 24  ;;  %s111_s22 = scalar_lea.sflag (!%p105_p2), [#allocation3], %s1809_s20 }
  0x30   : > { %s1260_s21 = smul.u32 (!%p105_p2), 1176, %s1809_s20 }
  0x32   : > { %s1815_s23 = scalar_lea.vmem (!%p105_p2), [#allocation2], %s1260_s21 }
  0x36   : > { %1676 = dma.done.wait (%p1750_p6), %s111_s22, 18816  }
  0x37   : > { %1678 = vsyncadd (%p1750_p6), %s111_s22, 4294948480  ;;  %v1822_v0 = vld [vmem:[%s1815_s23] sm:$0xff]  ;;  %v1825_v1 = vld [vmem:[%s1815_s23 + $0x8] sm:$0xff]  ;;  %s1925_s16 = scalar_lea.vmem [#allocation5], %s1260_s21  ;;  %s1258_s24 = smul.u32 18816, %s1732_s10 }
  0x38   : > { %v1828_v2 = vld [vmem:[%s1815_s23 + $0x10] sm:$0xff]  ;;  %v282_v3 = vmul.f32 0.70710677, %v1822_v0  ;;  %v283_v4 = vmul.f32 0.70710677, %v1825_v1  ;;  %v1834_v6 = vld [vmem:[%s1815_s23 + $0x18] sm:$0xff] }
  0x39   : > { %v284_v5 = vmul.f32 0.70710677, %v1828_v2  ;;  %v1837_v7 = vld [vmem:[%s1815_s23 + $0x20] sm:$0xff]  ;;  %v1840_v8 = vld [vmem:[%s1815_s23 + $0x28] sm:$0xff]  ;;  %v285_v9 = vmul.f32 0.70710677, %v1834_v6  ;;  %s2710_s28 = scalar_lea.hbm %s2756_s1, %s1258_s24 }
  0x3a   : > { %1307 = verf.f32 %v282_v3  ;;  %v286_v10 = vmul.f32 0.70710677, %v1837_v7  ;;  %v287_v11 = vmul.f32 0.70710677, %v1840_v8  ;;  %v1846_v12 = vld [vmem:[%s1815_s23 + $0x30] sm:$0xff]  ;;  %v1849_v13 = vld [vmem:[%s1815_s23 + $0x38] sm:$0xff] }
  0x3b   : > { %1309 = verf.f32 %v283_v4  ;;  %v1852_v14 = vld [vmem:[%s1815_s23 + $0x40] sm:$0xff]  ;;  %v288_v15 = vmul.f32 0.70710677, %v1846_v12  ;;  %v289_v16 = vmul.f32 0.70710677, %v1849_v13  ;;  %v1857_v17 = vld [vmem:[%s1815_s23 + $0x48] sm:$0xff] }
  0x3c   : > { %1311 = verf.f32 %v284_v5  ;;  %v1860_v18 = vld [vmem:[%s1815_s23 + $0x50] sm:$0xff]  ;;  %v1863_v19 = vld [vmem:[%s1815_s23 + $0x58] sm:$0xff]  ;;  %v290_v20 = vmul.f32 0.70710677, %v1852_v14  ;;  %v291_v21 = vmul.f32 0.70710677, %v1857_v17 }
  0x3d   : > { %1313 = verf.f32 %v285_v9  ;;  %v1868_v22 = vld [vmem:[%s1815_s23 + $0x60] sm:$0xff]  ;;  %v1871_v23 = vld [vmem:[%s1815_s23 + $0x68] sm:$0xff]  ;;  %v1874_v24 = vld [vmem:[%s1815_s23 + $0x70] sm:$0xff]  ;;  %v292_v25 = vmul.f32 0.70710677, %v1860_v18  ;;  %s1179_s25 = sshll.u32 %s1925_s16, 4  ;;  %s2712_s25 = int_to_ptr.vmem [resolvable:$true] %s1179_s25 }
  0x3e   : > { %1315 = verf.f32 %v286_v10  ;;  %v293_v26 = vmul.f32 0.70710677, %v1863_v19  ;;  %v294_v27 = vmul.f32 0.70710677, %v1868_v22  ;;  %v1880_v28 = vld [vmem:[%s1815_s23 + $0x78] sm:$0xff]  ;;  %v1883_v29 = vld [vmem:[%s1815_s23 + $0x80] sm:$0xff] }
  0x3f   : > { %1317 = verf.f32 %v287_v11  ;;  %v1886_v30 = vld [vmem:[%s1815_s23 + $0x88] sm:$0xff]  ;;  %v295_v31 = vmul.f32 0.70710677, %v1871_v23  ;;  %v296_v32 = vmul.f32 0.70710677, %v1874_v24  ;;  %v1893_v35 = vld [vmem:[%s1815_s23 + $0x90] sm:$0xff] }
  0x40   : > { %1319 = verf.f32 %v288_v15  ;;  %v297_v33 = vmul.f32 0.70710677, %v1880_v28  ;;  %v298_v34 = vmul.f32 0.70710677, %v1883_v29  ;;  %v1896_v36 = vld [vmem:[%s1815_s23 + $0x98] sm:$0xff]  ;;  %v1899_v37 = vld [vmem:[%s1815_s23 + $0xa0] sm:$0xff] }
  0x41   : > { %1321 = verf.f32 %v289_v16  ;;  %v299_v39 = vmul.f32 0.70710677, %v1886_v30  ;;  %v300_v40 = vmul.f32 0.70710677, %v1893_v35  ;;  %v301_v41 = vmul.f32 0.70710677, %v1896_v36 }
  0x42   : > { %1323 = verf.f32 %v290_v20  ;;  %v302_v44 = vmul.f32 0.70710677, %v1899_v37  ;;  %v1906_v45 = vld [vmem:[%s1815_s23 + $0xa8] sm:$0xff]  ;;  %v1909_v46 = vld [vmem:[%s1815_s23 + $0xb0] sm:$0xff]  ;;  %v1912_v47 = vld [vmem:[%s1815_s23 + $0xb8] sm:$0xff]  ;;  %s1165_s10 = scalar_lea.sflag [#allocation4], %s1809_s20 }
  0x43   : > { %1325 = verf.f32 %v291_v21  ;;  %v303_v50 = vmul.f32 0.70710677, %v1906_v45  ;;  %v304_v51 = vmul.f32 0.70710677, %v1909_v46  ;;  %v1917_v52 = vld [vmem:[%s1815_s23 + $0xc0] sm:$0xff]  ;;  %s1631_s29 = scalar_lea.vmem %s2712_s25, 18816 }
  0x44   : > { %v1308_v38 = vpop.eup %1307  ;;  %1327 = verf.f32 %v292_v25  ;;  %v305_v56 = vmul.f32 0.70710677, %v1912_v47  ;;  %v306_v60 = vmul.f32 0.70710677, %v1917_v52  ;;  %p1632_p6 = scmp.ne.s32.totalorder %s2712_s25, %s1631_s29  ;;  %p2764_p10 = scmp.ne.s32.totalorder %s2759_s17, 0 }
  0x45   : > { %v1310_v42 = vpop.eup %1309  ;;  %v576_v43 = vmul.f32 0.5, %v1308_v38  ;;  %1329 = verf.f32 %v293_v26  ;;  %s1700_s30 = smov [#allocation5]  }
  0x46   : > { %v1312_v48 = vpop.eup %1311  ;;  %v577_v49 = vmul.f32 0.5, %v1310_v42  ;;  %1331 = verf.f32 %v294_v27  ;;  %p1633_p11 = pnand %p1632_p6, %p2764_p10  ;;  %s1635_s2 = sshll.u32 %s1700_s30, 4  ;;  %s1636_s2 = int_to_ptr.vmem [resolvable:$false] %s1635_s2 }
  0x47   : > { %v1314_v53 = vpop.eup %1313  ;;  %v723_v54 = vadd.f32 0.5, %v576_v43  ;;  %v578_v55 = vmul.f32 0.5, %v1312_v48  ;;  %1333 = verf.f32 %v295_v31  ;;  %v1940_v48 = vld [vmem:[%s1815_s23 + $0xc8] sm:$0xff]  ;;  %s1637_s3 = scalar_lea.vmem %s1636_s2, 37632  ;;  %p1638_p4 = scmp.lt.s32.totalorder %s2712_s25, %s1636_s2 }
  0x48   : > { %v1316_v57 = vpop.eup %1315  ;;  %v724_v58 = vadd.f32 0.5, %v577_v49  ;;  %v579_v59 = vmul.f32 0.5, %v1314_v53  ;;  %1335 = verf.f32 %v296_v32  ;;  %p1634_p12 = pneg %p1633_p11  ;;  %p1639_p9 = scmp.lt.s32.totalorder %s1637_s3, %s1631_s29 }
  0x49   : > { %v1318_v61 = vpop.eup %1317  ;;  %v870_v62 = vmul.f32 %v723_v54, %v1822_v0  ;;  %v725_v63 = vadd.f32 0.5, %v578_v55  ;;  %v580_v3 = vmul.f32 0.5, %v1316_v57  ;;  %1337 = verf.f32 %v297_v33 }
  0x4a   : > { %v1320_v4 = vpop.eup %1319  ;;  %v871_v5 = vmul.f32 %v724_v58, %v1825_v1  ;;  %v726_v9 = vadd.f32 0.5, %v579_v59  ;;  %v581_v10 = vmul.f32 0.5, %v1318_v61  ;;  %1339 = verf.f32 %v298_v34  ;;  %p1640_p1 = por %p1639_p9, %p1638_p4 }
  0x4b   : > { %v1322_v11 = vpop.eup %1321  ;;  %1017 = vst [vmem:[%s1925_s16] sm:$0xff] %v870_v62  ;;  %v872_v15 = vmul.f32 %v725_v63, %v1828_v2  ;;  %v727_v0 = vadd.f32 0.5, %v580_v3  ;;  %v582_v16 = vmul.f32 0.5, %v1320_v4  ;;  %1341 = verf.f32 %v299_v39 }
  0x4c   : > { %v1324_v20 = vpop.eup %1323  ;;  %1018 = vst [vmem:[%s1925_s16 + $0x8] sm:$0xff] %v871_v5  ;;  %v873_v1 = vmul.f32 %v726_v9, %v1834_v6  ;;  %v728_v21 = vadd.f32 0.5, %v581_v10  ;;  %v583_v25 = vmul.f32 0.5, %v1322_v11  ;;  %1343 = verf.f32 %v300_v40  ;;  %v1961_v10 = vld [vmem:[%s1815_s23 + $0xe0] sm:$0xff]  ;;  %p1641_p3 = pnand %p1640_p1, %p1634_p12 }
  0x4d   : > { %v1326_v26 = vpop.eup %1325  ;;  %1019 = vst [vmem:[%s1925_s16 + $0x10] sm:$0xff] %v872_v15  ;;  %v874_v27 = vmul.f32 %v727_v0, %v1837_v7  ;;  %v729_v31 = vadd.f32 0.5, %v582_v16  ;;  %v584_v32 = vmul.f32 0.5, %v1324_v20  ;;  %1345 = verf.f32 %v301_v41 }
  0x4e   : > { %v1328_v2 = vpop.eup %1327  ;;  %1020 = vst [vmem:[%s1925_s16 + $0x18] sm:$0xff] %v873_v1  ;;  %v875_v33 = vmul.f32 %v728_v21, %v1840_v8  ;;  %v730_v34 = vadd.f32 0.5, %v583_v25  ;;  %v585_v38 = vmul.f32 0.5, %v1326_v26  ;;  %1347 = verf.f32 %v302_v44 }
  0x4f   : > { %v1330_v6 = vpop.eup %1329  ;;  %1021 = vst [vmem:[%s1925_s16 + $0x20] sm:$0xff] %v874_v27  ;;  %v876_v39 = vmul.f32 %v729_v31, %v1846_v12  ;;  %v731_v40 = vadd.f32 0.5, %v584_v32  ;;  %v586_v7 = vmul.f32 0.5, %v1328_v2  ;;  %1349 = verf.f32 %v303_v50  ;;  %v1945_v50 = vld [vmem:[%s1815_s23 + $0xd0] sm:$0xff]  ;;  %v1972_v32 = vld [vmem:[%s1815_s23 + $0xe8] sm:$0xff] }
  0x50   : > { %v1332_v42 = vpop.eup %1331  ;;  %1022 = vst [vmem:[%s1925_s16 + $0x28] sm:$0xff] %v875_v33  ;;  %v877_v41 = vmul.f32 %v730_v34, %v1849_v13  ;;  %v732_v43 = vadd.f32 0.5, %v585_v38  ;;  %v587_v8 = vmul.f32 0.5, %v1330_v6  ;;  %1351 = verf.f32 %v304_v51  ;;  %v1977_v38 = vld [vmem:[%s1815_s23 + $0xf0] sm:$0xff] }
  0x51   : > { %v1334_v44 = vpop.eup %1333  ;;  %1023 = vst [vmem:[%s1925_s16 + $0x30] sm:$0xff] %v876_v39  ;;  %v878_v49 = vmul.f32 %v731_v40, %v1852_v14  ;;  %v733_v12 = vadd.f32 0.5, %v586_v7  ;;  %v588_v53 = vmul.f32 0.5, %v1332_v42  ;;  %1353 = verf.f32 %v305_v56 }
  0x52   : > { %v1336_v54 = vpop.eup %1335  ;;  %1024 = vst [vmem:[%s1925_s16 + $0x38] sm:$0xff] %v877_v41  ;;  %v879_v13 = vmul.f32 %v732_v43, %v1857_v17  ;;  %v734_v55 = vadd.f32 0.5, %v587_v8  ;;  %v589_v51 = vmul.f32 0.5, %v1334_v44  ;;  %1355 = verf.f32 %v306_v60  ;;  %v1956_v60 = vld [vmem:[%s1815_s23 + $0xd8] sm:$0xff] }
  0x53   : > { %v1338_v57 = vpop.eup %1337  ;;  %1025 = vst [vmem:[%s1925_s16 + $0x40] sm:$0xff] %v878_v49  ;;  %v880_v58 = vmul.f32 %v733_v12, %v1860_v18  ;;  %v735_v14 = vadd.f32 0.5, %v588_v53  ;;  %v590_v59 = vmul.f32 0.5, %v1336_v54  ;;  %v307_v56 = vmul.f32 0.70710677, %v1940_v48  ;;  %v1985_v8 = vld [vmem:[%s1815_s23 + $0xf8] sm:$0xff] }
  0x54   : > { %v1340_v61 = vpop.eup %1339  ;;  %1026 = vst [vmem:[%s1925_s16 + $0x48] sm:$0xff] %v879_v13  ;;  %v881_v62 = vmul.f32 %v734_v55, %v1863_v19  ;;  %v736_v17 = vadd.f32 0.5, %v589_v51  ;;  %v591_v63 = vmul.f32 0.5, %v1338_v57  ;;  %v308_v3 = vmul.f32 0.70710677, %v1945_v50  ;;  %v1991_v54 = vld [vmem:[%s1815_s23 + $0x100] sm:$0xff] }
  0x55   : > { %v1342_v4 = vpop.eup %1341  ;;  %1027 = vst [vmem:[%s1925_s16 + $0x50] sm:$0xff] %v880_v58  ;;  %v882_v18 = vmul.f32 %v735_v14, %v1868_v22  ;;  %v737_v5 = vadd.f32 0.5, %v590_v59  ;;  %v592_v9 = vmul.f32 0.5, %v1340_v61  ;;  %1357 = verf.f32 %v307_v56  ;;  %v1999_v57 = vld [vmem:[%s1815_s23 + $0x110] sm:$0xff]  ;;  %v2005_v59 = vld [vmem:[%s1815_s23 + $0x118] sm:$0xff]  ;;  %v2008_v56 = vld [vmem:[%s1815_s23 + $0x120] sm:$0xff] }
  0x56   : > { %v1344_v11 = vpop.eup %1343  ;;  %1028 = vst [vmem:[%s1925_s16 + $0x58] sm:$0xff] %v881_v62  ;;  %v883_v19 = vmul.f32 %v736_v17, %v1871_v23  ;;  %v738_v15 = vadd.f32 0.5, %v591_v63  ;;  %v593_v0 = vmul.f32 0.5, %v1342_v4  ;;  %1359 = verf.f32 %v308_v3  ;;  %v2015_v63 = vld [vmem:[%s1815_s23 + $0x128] sm:$0xff] }
  0x57   : > { %v1346_v16 = vpop.eup %1345  ;;  %1029 = vst [vmem:[%s1925_s16 + $0x60] sm:$0xff] %v882_v18  ;;  %v884_v20 = vmul.f32 %v737_v5, %v1874_v24  ;;  %v739_v22 = vadd.f32 0.5, %v592_v9  ;;  %v594_v1 = vmul.f32 0.5, %v1344_v11  ;;  %v309_v21 = vmul.f32 0.70710677, %v1956_v60  ;;  %v2024_v9 = vld [vmem:[%s1815_s23 + $0x138] sm:$0xff] }
  0x58   : > { %v1348_v25 = vpop.eup %1347  ;;  %1030 = vst [vmem:[%s1925_s16 + $0x68] sm:$0xff] %v883_v19  ;;  %v885_v26 = vmul.f32 %v738_v15, %v1880_v28  ;;  %v740_v23 = vadd.f32 0.5, %v593_v0  ;;  %v595_v27 = vmul.f32 0.5, %v1346_v16  ;;  %v310_v31 = vmul.f32 0.70710677, %v1961_v10  ;;  %v2030_v0 = vld [vmem:[%s1815_s23 + $0x140] sm:$0xff] }
  0x59   : > { %v1350_v2 = vpop.eup %1349  ;;  %1031 = vst [vmem:[%s1925_s16 + $0x70] sm:$0xff] %v884_v20  ;;  %v886_v24 = vmul.f32 %v739_v22, %v1883_v29  ;;  %v741_v33 = vadd.f32 0.5, %v594_v1  ;;  %v596_v34 = vmul.f32 0.5, %v1348_v25  ;;  %1361 = verf.f32 %v309_v21  ;;  %v2039_v1 = vld [vmem:[%s1815_s23 + $0x150] sm:$0xff] }
  0x5a   : > { %v1352_v6 = vpop.eup %1351  ;;  %1032 = vst [vmem:[%s1925_s16 + $0x78] sm:$0xff] %v885_v26  ;;  %v887_v28 = vmul.f32 %v740_v23, %v1886_v30  ;;  %v742_v39 = vadd.f32 0.5, %v595_v27  ;;  %v597_v40 = vmul.f32 0.5, %v1350_v2  ;;  %1363 = verf.f32 %v310_v31  ;;  %v2045_v23 = vld [vmem:[%s1815_s23 + $0x158] sm:$0xff] }
  0x5b   : > { %v1354_v7 = vpop.eup %1353  ;;  %1033 = vst [vmem:[%s1925_s16 + $0x80] sm:$0xff] %v886_v24  ;;  %v888_v29 = vmul.f32 %v741_v33, %v1893_v35  ;;  %v743_v42 = vadd.f32 0.5, %v596_v34  ;;  %v598_v41 = vmul.f32 0.5, %v1352_v6  ;;  %v311_v43 = vmul.f32 0.70710677, %v1972_v32  ;;  %v1994_v35 = vld [vmem:[%s1815_s23 + $0x108] sm:$0xff] }
  0x5c   : > { %v1356_v44 = vpop.eup %1355  ;;  %1034 = vst [vmem:[%s1925_s16 + $0x88] sm:$0xff] %v887_v28  ;;  %v889_v30 = vmul.f32 %v742_v39, %v1896_v36  ;;  %v744_v49 = vadd.f32 0.5, %v597_v40  ;;  %v599_v12 = vmul.f32 0.5, %v1354_v7  ;;  %v312_v53 = vmul.f32 0.70710677, %v1977_v38  ;;  %v2050_v33 = vld [vmem:[%s1815_s23 + $0x160] sm:$0xff] }
  0x5d   : > { %1035 = vst [vmem:[%s1925_s16 + $0x90] sm:$0xff] %v888_v29  ;;  %v890_v13 = vmul.f32 %v743_v42, %v1899_v37  ;;  %v745_v55 = vadd.f32 0.5, %v598_v41  ;;  %v600_v51 = vmul.f32 0.5, %v1356_v44  ;;  %1365 = verf.f32 %v311_v43  ;;  %v2053_v34 = vld [vmem:[%s1815_s23 + $0x168] sm:$0xff]  ;;  %v2058_v40 = vld [vmem:[%s1815_s23 + $0x170] sm:$0xff]  ;;  %v2067_v41 = vld [vmem:[%s1815_s23 + $0x180] sm:$0xff] }
  0x5e   : > { %1036 = vst [vmem:[%s1925_s16 + $0x98] sm:$0xff] %v889_v30  ;;  %v891_v36 = vmul.f32 %v744_v49, %v1906_v45  ;;  %v746_v58 = vadd.f32 0.5, %v599_v12  ;;  %1367 = verf.f32 %v312_v53  ;;  %v313_v14 = vmul.f32 0.70710677, %v1985_v8  ;;  %v2073_v49 = vld [vmem:[%s1815_s23 + $0x188] sm:$0xff] }
  0x5f   : > { %v1358_v37 = vpop.eup %1357  ;;  %1037 = vst [vmem:[%s1925_s16 + $0xa0] sm:$0xff] %v890_v13  ;;  %v892_v61 = vmul.f32 %v745_v55, %v1909_v46  ;;  %v747_v62 = vadd.f32 0.5, %v600_v51  ;;  %v314_v17 = vmul.f32 0.70710677, %v1991_v54  ;;  %v315_v45 = vmul.f32 0.70710677, %v1994_v35 }
  0x60   : > { %v1360_v3 = vpop.eup %1359  ;;  %1038 = vst [vmem:[%s1925_s16 + $0xa8] sm:$0xff] %v891_v36  ;;  %v893_v4 = vmul.f32 %v746_v58, %v1912_v47  ;;  %v601_v18 = vmul.f32 0.5, %v1358_v37  ;;  %1369 = verf.f32 %v313_v14  ;;  %v316_v5 = vmul.f32 0.70710677, %v1999_v57  ;;  %v2021_v46 = vld [vmem:[%s1815_s23 + $0x130] sm:$0xff]  ;;  %v2033_v47 = vld [vmem:[%s1815_s23 + $0x148] sm:$0xff] }
  0x61   : > { %1039 = vst [vmem:[%s1925_s16 + $0xb0] sm:$0xff] %v892_v61  ;;  %v894_v11 = vmul.f32 %v747_v62, %v1917_v52  ;;  %v602_v19 = vmul.f32 0.5, %v1360_v3  ;;  %1371 = verf.f32 %v314_v17  ;;  %v317_v15 = vmul.f32 0.70710677, %v2005_v59  ;;  %v2078_v51 = vld [vmem:[%s1815_s23 + $0x190] sm:$0xff]  ;;  %v2083_v37 = vld [vmem:[%s1815_s23 + $0x198] sm:$0xff] }
  0x62   : > { %1040 = vst [vmem:[%s1925_s16 + $0xb8] sm:$0xff] %v893_v4  ;;  %v748_v16 = vadd.f32 0.5, %v601_v18  ;;  %1373 = verf.f32 %v315_v45  ;;  %v318_v20 = vmul.f32 0.70710677, %v2008_v56  ;;  %v319_v22 = vmul.f32 0.70710677, %v2015_v63 }
  0x63   : > { %v1362_v52 = vpop.eup %1361  ;;  %1041 = vst [vmem:[%s1925_s16 + $0xc0] sm:$0xff] %v894_v11  ;;  %v749_v21 = vadd.f32 0.5, %v602_v19  ;;  %1375 = verf.f32 %v316_v5  ;;  %v320_v25 = vmul.f32 0.70710677, %v2021_v46  ;;  %v321_v26 = vmul.f32 0.70710677, %v2024_v9 }
  0x64   : > { %v1364_v27 = vpop.eup %1363  ;;  %v895_v31 = vmul.f32 %v748_v16, %v1940_v48  ;;  %v603_v2 = vmul.f32 0.5, %v1362_v52  ;;  %1377 = verf.f32 %v317_v15  ;;  %v322_v24 = vmul.f32 0.70710677, %v2030_v0  ;;  %v2061_v48 = vld [vmem:[%s1815_s23 + $0x178] sm:$0xff]  ;;  %v2091_v18 = vld [vmem:[%s1815_s23 + $0x1a0] sm:$0xff] }
  0x65   : > { %v896_v6 = vmul.f32 %v749_v21, %v1945_v50  ;;  %v604_v28 = vmul.f32 0.5, %v1364_v27  ;;  %1379 = verf.f32 %v318_v20  ;;  %v323_v39 = vmul.f32 0.70710677, %v2033_v47 }
  0x66   : > { %1042 = vst [vmem:[%s1925_s16 + $0xc8] sm:$0xff] %v895_v31  ;;  %v750_v7 = vadd.f32 0.5, %v603_v2  ;;  %1381 = verf.f32 %v319_v22  ;;  %v324_v29 = vmul.f32 0.70710677, %v2039_v1  ;;  %v325_v42 = vmul.f32 0.70710677, %v2045_v23 }
  0x67   : > { %v1366_v50 = vpop.eup %1365  ;;  %1043 = vst [vmem:[%s1925_s16 + $0xd0] sm:$0xff] %v896_v6  ;;  %v751_v43 = vadd.f32 0.5, %v604_v28  ;;  %1383 = verf.f32 %v320_v25  ;;  %v326_v44 = vmul.f32 0.70710677, %v2050_v33  ;;  %v327_v30 = vmul.f32 0.70710677, %v2053_v34 }
  0x68   : > { %v1368_v12 = vpop.eup %1367  ;;  %v897_v53 = vmul.f32 %v750_v7, %v1956_v60  ;;  %v605_v13 = vmul.f32 0.5, %v1366_v50  ;;  %1385 = verf.f32 %v321_v26  ;;  %v328_v55 = vmul.f32 0.70710677, %v2058_v40 }
  0x69   : > { %v898_v36 = vmul.f32 %v751_v43, %v1961_v10  ;;  %v606_v58 = vmul.f32 0.5, %v1368_v12  ;;  %1387 = verf.f32 %v322_v24  ;;  %v329_v14 = vmul.f32 0.70710677, %v2061_v48 }
  0x6a   : > { %v1370_v61 = vpop.eup %1369  ;;  %1044 = vst [vmem:[%s1925_s16 + $0xd8] sm:$0xff] %v897_v53  ;;  %v752_v62 = vadd.f32 0.5, %v605_v13  ;;  %1389 = verf.f32 %v323_v39  ;;  %v330_v60 = vmul.f32 0.70710677, %v2067_v41  ;;  %v331_v17 = vmul.f32 0.70710677, %v2073_v49 }
  0x6b   : > { %v1372_v45 = vpop.eup %1371  ;;  %1045 = vst [vmem:[%s1925_s16 + $0xe0] sm:$0xff] %v898_v36  ;;  %v753_v3 = vadd.f32 0.5, %v606_v58  ;;  %v607_v10 = vmul.f32 0.5, %v1370_v61  ;;  %1391 = verf.f32 %v324_v29  ;;  %v332_v4 = vmul.f32 0.70710677, %v2078_v51  ;;  %v2108_v13 = vld [vmem:[%s1815_s23 + $0x1a8] sm:$0xff] }
  0x6c   : > { %v1374_v5 = vpop.eup %1373  ;;  %v899_v11 = vmul.f32 %v752_v62, %v1972_v32  ;;  %v608_v19 = vmul.f32 0.5, %v1372_v45  ;;  %1393 = verf.f32 %v325_v42  ;;  %v333_v15 = vmul.f32 0.70710677, %v2083_v37 }
  0x6d   : > { %v1376_v16 = vpop.eup %1375  ;;  %v900_v20 = vmul.f32 %v753_v3, %v1977_v38  ;;  %v754_v22 = vadd.f32 0.5, %v607_v10  ;;  %v609_v52 = vmul.f32 0.5, %v1374_v5  ;;  %1395 = verf.f32 %v326_v44 }
  0x6e   : > { %v1378_v21 = vpop.eup %1377  ;;  %1046 = vst [vmem:[%s1925_s16 + $0xe8] sm:$0xff] %v899_v11  ;;  %v755_v25 = vadd.f32 0.5, %v608_v19  ;;  %v610_v26 = vmul.f32 0.5, %v1376_v16  ;;  %1397 = verf.f32 %v327_v30  ;;  %v334_v27 = vmul.f32 0.70710677, %v2091_v18 }
  0x6f   : > { %v1380_v32 = vpop.eup %1379  ;;  %1047 = vst [vmem:[%s1925_s16 + $0xf0] sm:$0xff] %v900_v20  ;;  %v901_v31 = vmul.f32 %v754_v22, %v1985_v8  ;;  %v756_v2 = vadd.f32 0.5, %v609_v52  ;;  %v611_v24 = vmul.f32 0.5, %v1378_v21  ;;  %1399 = verf.f32 %v328_v55  ;;  %v2129_v52 = vld [vmem:[%s1815_s23 + $0x1c0] sm:$0xff] }
  0x70   : > { %v1382_v38 = vpop.eup %1381  ;;  %v902_v6 = vmul.f32 %v755_v25, %v1991_v54  ;;  %v757_v28 = vadd.f32 0.5, %v610_v26  ;;  %v612_v39 = vmul.f32 0.5, %v1380_v32  ;;  %1401 = verf.f32 %v329_v14  ;;  %v2113_v14 = vld [vmem:[%s1815_s23 + $0x1b0] sm:$0xff] }
  0x71   : > { %v1384_v7 = vpop.eup %1383  ;;  %1048 = vst [vmem:[%s1925_s16 + $0xf8] sm:$0xff] %v901_v31  ;;  %v903_v29 = vmul.f32 %v756_v2, %v1994_v35  ;;  %v758_v42 = vadd.f32 0.5, %v611_v24  ;;  %v613_v50 = vmul.f32 0.5, %v1382_v38  ;;  %1403 = verf.f32 %v330_v60 }
  0x72   : > { %v1386_v8 = vpop.eup %1385  ;;  %1049 = vst [vmem:[%s1925_s16 + $0x100] sm:$0xff] %v902_v6  ;;  %v904_v43 = vmul.f32 %v757_v28, %v1999_v57  ;;  %v759_v44 = vadd.f32 0.5, %v612_v39  ;;  %v614_v54 = vmul.f32 0.5, %v1384_v7  ;;  %1405 = verf.f32 %v331_v17  ;;  %v2140_v39 = vld [vmem:[%s1815_s23 + $0x1c8] sm:$0xff] }
  0x73   : > { %v1388_v30 = vpop.eup %1387  ;;  %1050 = vst [vmem:[%s1925_s16 + $0x108] sm:$0xff] %v903_v29  ;;  %v905_v12 = vmul.f32 %v758_v42, %v2005_v59  ;;  %v760_v53 = vadd.f32 0.5, %v613_v50  ;;  %v615_v35 = vmul.f32 0.5, %v1386_v8  ;;  %1407 = verf.f32 %v332_v4  ;;  %v2145_v50 = vld [vmem:[%s1815_s23 + $0x1d0] sm:$0xff] }
  0x74   : > { %v1390_v55 = vpop.eup %1389  ;;  %1051 = vst [vmem:[%s1925_s16 + $0x110] sm:$0xff] %v904_v43  ;;  %v906_v36 = vmul.f32 %v759_v44, %v2008_v56  ;;  %v761_v57 = vadd.f32 0.5, %v614_v54  ;;  %v616_v58 = vmul.f32 0.5, %v1388_v30  ;;  %1409 = verf.f32 %v333_v15  ;;  %v2124_v15 = vld [vmem:[%s1815_s23 + $0x1b8] sm:$0xff] }
  0x75   : > { %v1392_v61 = vpop.eup %1391  ;;  %1052 = vst [vmem:[%s1925_s16 + $0x118] sm:$0xff] %v905_v12  ;;  %v907_v59 = vmul.f32 %v760_v53, %v2015_v63  ;;  %v762_v62 = vadd.f32 0.5, %v615_v35  ;;  %v617_v60 = vmul.f32 0.5, %v1390_v55  ;;  %1411 = verf.f32 %v334_v27  ;;  %v2153_v35 = vld [vmem:[%s1815_s23 + $0x1d8] sm:$0xff] }
  0x76   : > { %v1394_v17 = vpop.eup %1393  ;;  %1053 = vst [vmem:[%s1925_s16 + $0x120] sm:$0xff] %v906_v36  ;;  %v908_v45 = vmul.f32 %v761_v57, %v2021_v46  ;;  %v763_v56 = vadd.f32 0.5, %v616_v58  ;;  %v618_v3 = vmul.f32 0.5, %v1392_v61  ;;  %v335_v10 = vmul.f32 0.70710677, %v2108_v13  ;;  %v2159_v61 = vld [vmem:[%s1815_s23 + $0x1e0] sm:$0xff] }
  0x77   : > { %v1396_v4 = vpop.eup %1395  ;;  %1054 = vst [vmem:[%s1925_s16 + $0x128] sm:$0xff] %v907_v59  ;;  %v909_v5 = vmul.f32 %v762_v62, %v2024_v9  ;;  %v764_v63 = vadd.f32 0.5, %v617_v60  ;;  %v619_v11 = vmul.f32 0.5, %v1394_v17  ;;  %v336_v19 = vmul.f32 0.70710677, %v2113_v14  ;;  %v2167_v17 = vld [vmem:[%s1815_s23 + $0x1f0] sm:$0xff] }
  0x78   : > { %v1398_v16 = vpop.eup %1397  ;;  %1055 = vst [vmem:[%s1925_s16 + $0x130] sm:$0xff] %v908_v45  ;;  %v910_v46 = vmul.f32 %v763_v56, %v2030_v0  ;;  %v765_v20 = vadd.f32 0.5, %v618_v3  ;;  %v620_v22 = vmul.f32 0.5, %v1396_v4  ;;  %1413 = verf.f32 %v335_v10  ;;  %v2173_v3 = vld [vmem:[%s1815_s23 + $0x1f8] sm:$0xff]  ;;  %v2176_v10 = vld [vmem:[%s1815_s23 + $0x200] sm:$0xff] }
  0x79   : > { %v1400_v21 = vpop.eup %1399  ;;  %1056 = vst [vmem:[%s1925_s16 + $0x138] sm:$0xff] %v909_v5  ;;  %v911_v9 = vmul.f32 %v764_v63, %v2033_v47  ;;  %v766_v25 = vadd.f32 0.5, %v619_v11  ;;  %v621_v26 = vmul.f32 0.5, %v1398_v16  ;;  %1415 = verf.f32 %v336_v19  ;;  %v2183_v11 = vld [vmem:[%s1815_s23 + $0x208] sm:$0xff] }
  0x7a   : > { %v1402_v27 = vpop.eup %1401  ;;  %1057 = vst [vmem:[%s1925_s16 + $0x140] sm:$0xff] %v910_v46  ;;  %v912_v32 = vmul.f32 %v765_v20, %v2039_v1  ;;  %v767_v0 = vadd.f32 0.5, %v620_v22  ;;  %v622_v31 = vmul.f32 0.5, %v1400_v21  ;;  %v337_v2 = vmul.f32 0.70710677, %v2124_v15  ;;  %v2192_v22 = vld [vmem:[%s1815_s23 + $0x218] sm:$0xff] }
  0x7b   : > { %v1404_v24 = vpop.eup %1403  ;;  %1058 = vst [vmem:[%s1925_s16 + $0x148] sm:$0xff] %v911_v9  ;;  %v913_v38 = vmul.f32 %v766_v25, %v2045_v23  ;;  %v768_v47 = vadd.f32 0.5, %v621_v26  ;;  %v623_v6 = vmul.f32 0.5, %v1402_v27  ;;  %v338_v28 = vmul.f32 0.70710677, %v2129_v52  ;;  %v2198_v26 = vld [vmem:[%s1815_s23 + $0x220] sm:$0xff] }
  0x7c   : > { %v1406_v7 = vpop.eup %1405  ;;  %1059 = vst [vmem:[%s1925_s16 + $0x150] sm:$0xff] %v912_v32  ;;  %v914_v1 = vmul.f32 %v767_v0, %v2050_v33  ;;  %v769_v29 = vadd.f32 0.5, %v622_v31  ;;  %v624_v42 = vmul.f32 0.5, %v1404_v24  ;;  %1417 = verf.f32 %v337_v2  ;;  %v2207_v31 = vld [vmem:[%s1815_s23 + $0x230] sm:$0xff] }
  0x7d   : > { %v1408_v8 = vpop.eup %1407  ;;  %1060 = vst [vmem:[%s1925_s16 + $0x158] sm:$0xff] %v913_v38  ;;  %v915_v23 = vmul.f32 %v768_v47, %v2053_v34  ;;  %v770_v43 = vadd.f32 0.5, %v623_v6  ;;  %v625_v44 = vmul.f32 0.5, %v1406_v7  ;;  %1419 = verf.f32 %v338_v28  ;;  %v2213_v47 = vld [vmem:[%s1815_s23 + $0x238] sm:$0xff] }
  0x7e   : > { %v1410_v54 = vpop.eup %1409  ;;  %1061 = vst [vmem:[%s1925_s16 + $0x160] sm:$0xff] %v914_v1  ;;  %v916_v33 = vmul.f32 %v769_v29, %v2058_v40  ;;  %v771_v30 = vadd.f32 0.5, %v624_v42  ;;  %v626_v12 = vmul.f32 0.5, %v1408_v8  ;;  %v339_v53 = vmul.f32 0.70710677, %v2140_v39  ;;  %v2162_v40 = vld [vmem:[%s1815_s23 + $0x1e8] sm:$0xff] }
  0x7f   : > { %v1412_v55 = vpop.eup %1411  ;;  %1062 = vst [vmem:[%s1925_s16 + $0x168] sm:$0xff] %v915_v23  ;;  %v917_v34 = vmul.f32 %v770_v43, %v2061_v48  ;;  %v772_v36 = vadd.f32 0.5, %v625_v44  ;;  %v627_v57 = vmul.f32 0.5, %v1410_v54  ;;  %v340_v58 = vmul.f32 0.70710677, %v2145_v50  ;;  %v2218_v29 = vld [vmem:[%s1815_s23 + $0x240] sm:$0xff] }
  0x80   : > { %1063 = vst [vmem:[%s1925_s16 + $0x170] sm:$0xff] %v916_v33  ;;  %v918_v59 = vmul.f32 %v771_v30, %v2067_v41  ;;  %v773_v62 = vadd.f32 0.5, %v626_v12  ;;  %v628_v60 = vmul.f32 0.5, %v1412_v55  ;;  %1421 = verf.f32 %v339_v53  ;;  %v2221_v42 = vld [vmem:[%s1815_s23 + $0x248] sm:$0xff]  ;;  %v2226_v44 = vld [vmem:[%s1815_s23 + $0x250] sm:$0xff]  ;;  %v2235_v12 = vld [vmem:[%s1815_s23 + $0x260] sm:$0xff] }
  0x81   : > { %1064 = vst [vmem:[%s1925_s16 + $0x178] sm:$0xff] %v917_v34  ;;  %v919_v48 = vmul.f32 %v772_v36, %v2073_v49  ;;  %v774_v45 = vadd.f32 0.5, %v627_v57  ;;  %1423 = verf.f32 %v340_v58  ;;  %v341_v56 = vmul.f32 0.70710677, %v2153_v35  ;;  %v2241_v36 = vld [vmem:[%s1815_s23 + $0x268] sm:$0xff] }
  0x82   : > { %v1414_v41 = vpop.eup %1413  ;;  %1065 = vst [vmem:[%s1925_s16 + $0x180] sm:$0xff] %v918_v59  ;;  %v920_v4 = vmul.f32 %v773_v62, %v2078_v51  ;;  %v775_v5 = vadd.f32 0.5, %v628_v60  ;;  %v342_v63 = vmul.f32 0.70710677, %v2159_v61  ;;  %v343_v49 = vmul.f32 0.70710677, %v2162_v40 }
  0x83   : > { %v1416_v19 = vpop.eup %1415  ;;  %1066 = vst [vmem:[%s1925_s16 + $0x188] sm:$0xff] %v919_v48  ;;  %v921_v16 = vmul.f32 %v774_v45, %v2083_v37  ;;  %v629_v46 = vmul.f32 0.5, %v1414_v41  ;;  %1425 = verf.f32 %v341_v56  ;;  %v344_v20 = vmul.f32 0.70710677, %v2167_v17  ;;  %v2189_v51 = vld [vmem:[%s1815_s23 + $0x210] sm:$0xff]  ;;  %v2201_v37 = vld [vmem:[%s1815_s23 + $0x228] sm:$0xff] }
  0x84   : > { %1067 = vst [vmem:[%s1925_s16 + $0x190] sm:$0xff] %v920_v4  ;;  %v922_v21 = vmul.f32 %v775_v5, %v2091_v18  ;;  %v630_v9 = vmul.f32 0.5, %v1416_v19  ;;  %1427 = verf.f32 %v342_v63  ;;  %v345_v25 = vmul.f32 0.70710677, %v2173_v3  ;;  %v2246_v60 = vld [vmem:[%s1815_s23 + $0x270] sm:$0xff]  ;;  %v2251_v41 = vld [vmem:[%s1815_s23 + $0x278] sm:$0xff] }
  0x85   : > { %1068 = vst [vmem:[%s1925_s16 + $0x198] sm:$0xff] %v921_v16  ;;  %v776_v27 = vadd.f32 0.5, %v629_v46  ;;  %1429 = verf.f32 %v343_v49  ;;  %v346_v32 = vmul.f32 0.70710677, %v2176_v10  ;;  %v347_v0 = vmul.f32 0.70710677, %v2183_v11 }
  0x86   : > { %v1418_v18 = vpop.eup %1417  ;;  %1069 = vst [vmem:[%s1925_s16 + $0x1a0] sm:$0xff] %v922_v21  ;;  %v777_v2 = vadd.f32 0.5, %v630_v9  ;;  %1431 = verf.f32 %v344_v20  ;;  %v348_v24 = vmul.f32 0.70710677, %v2189_v51  ;;  %v349_v38 = vmul.f32 0.70710677, %v2192_v22 }
  0x87   : > { %v1420_v6 = vpop.eup %1419  ;;  %v923_v28 = vmul.f32 %v776_v27, %v2108_v13  ;;  %v631_v7 = vmul.f32 0.5, %v1418_v18  ;;  %1433 = verf.f32 %v345_v25  ;;  %v350_v1 = vmul.f32 0.70710677, %v2198_v26  ;;  %v2229_v13 = vld [vmem:[%s1815_s23 + $0x258] sm:$0xff]  ;;  %v2259_v46 = vld [vmem:[%s1815_s23 + $0x280] sm:$0xff] }
  0x88   : > { %v924_v8 = vmul.f32 %v777_v2, %v2113_v14  ;;  %v632_v23 = vmul.f32 0.5, %v1420_v6  ;;  %1435 = verf.f32 %v346_v32  ;;  %v351_v43 = vmul.f32 0.70710677, %v2201_v37 }
  0x89   : > { %1070 = vst [vmem:[%s1925_s16 + $0x1a8] sm:$0xff] %v923_v28  ;;  %v778_v54 = vadd.f32 0.5, %v631_v7  ;;  %1437 = verf.f32 %v347_v0  ;;  %v352_v33 = vmul.f32 0.70710677, %v2207_v31  ;;  %v353_v30 = vmul.f32 0.70710677, %v2213_v47 }
  0x8a   : > { %v1422_v14 = vpop.eup %1421  ;;  %1071 = vst [vmem:[%s1925_s16 + $0x1b0] sm:$0xff] %v924_v8  ;;  %v779_v53 = vadd.f32 0.5, %v632_v23  ;;  %1439 = verf.f32 %v348_v24  ;;  %v354_v55 = vmul.f32 0.70710677, %v2218_v29  ;;  %v355_v34 = vmul.f32 0.70710677, %v2221_v42 }
  0x8b   : > { %v1424_v57 = vpop.eup %1423  ;;  %v925_v58 = vmul.f32 %v778_v54, %v2124_v15  ;;  %v633_v59 = vmul.f32 0.5, %v1422_v14  ;;  %1441 = verf.f32 %v349_v38  ;;  %v356_v62 = vmul.f32 0.70710677, %v2226_v44 }
  0x8c   : > { %v926_v48 = vmul.f32 %v779_v53, %v2129_v52  ;;  %v634_v45 = vmul.f32 0.5, %v1424_v57  ;;  %1443 = verf.f32 %v350_v1  ;;  %v357_v56 = vmul.f32 0.70710677, %v2229_v13 }
  0x8d   : > { %v1426_v4 = vpop.eup %1425  ;;  %1072 = vst [vmem:[%s1925_s16 + $0x1b8] sm:$0xff] %v925_v58  ;;  %v780_v5 = vadd.f32 0.5, %v633_v59  ;;  %1445 = verf.f32 %v351_v43  ;;  %v358_v15 = vmul.f32 0.70710677, %v2235_v12  ;;  %v359_v63 = vmul.f32 0.70710677, %v2241_v36 }
  0x8e   : > { %v1428_v49 = vpop.eup %1427  ;;  %1073 = vst [vmem:[%s1925_s16 + $0x1c0] sm:$0xff] %v926_v48  ;;  %v781_v19 = vadd.f32 0.5, %v634_v45  ;;  %v635_v52 = vmul.f32 0.5, %v1426_v4  ;;  %1447 = verf.f32 %v352_v33  ;;  %v360_v16 = vmul.f32 0.70710677, %v2246_v60  ;;  %v2276_v59 = vld [vmem:[%s1815_s23 + $0x288] sm:$0xff] }
  0x8f   : > { %v1430_v20 = vpop.eup %1429  ;;  %v927_v21 = vmul.f32 %v780_v5, %v2140_v39  ;;  %v636_v9 = vmul.f32 0.5, %v1428_v49  ;;  %1449 = verf.f32 %v353_v30  ;;  %v361_v25 = vmul.f32 0.70710677, %v2251_v41 }
  0x90   : > { %v1432_v27 = vpop.eup %1431  ;;  %v928_v32 = vmul.f32 %v781_v19, %v2145_v50  ;;  %v782_v0 = vadd.f32 0.5, %v635_v52  ;;  %v637_v18 = vmul.f32 0.5, %v1430_v20  ;;  %1451 = verf.f32 %v354_v55 }
  0x91   : > { %v1434_v2 = vpop.eup %1433  ;;  %1074 = vst [vmem:[%s1925_s16 + $0x1c8] sm:$0xff] %v927_v21  ;;  %v783_v24 = vadd.f32 0.5, %v636_v9  ;;  %v638_v38 = vmul.f32 0.5, %v1432_v27  ;;  %1453 = verf.f32 %v355_v34  ;;  %v362_v6 = vmul.f32 0.70710677, %v2259_v46 }
  0x92   : > { %v1436_v39 = vpop.eup %1435  ;;  %1075 = vst [vmem:[%s1925_s16 + $0x1d0] sm:$0xff] %v928_v32  ;;  %v929_v28 = vmul.f32 %v782_v0, %v2153_v35  ;;  %v784_v7 = vadd.f32 0.5, %v637_v18  ;;  %v639_v1 = vmul.f32 0.5, %v1434_v2  ;;  %1455 = verf.f32 %v356_v62  ;;  %v2297_v18 = vld [vmem:[%s1815_s23 + $0x2a0] sm:$0xff] }
  0x93   : > { %v1438_v50 = vpop.eup %1437  ;;  %v930_v8 = vmul.f32 %v783_v24, %v2159_v61  ;;  %v785_v23 = vadd.f32 0.5, %v638_v38  ;;  %v640_v43 = vmul.f32 0.5, %v1436_v39  ;;  %1457 = verf.f32 %v357_v56  ;;  %v2281_v56 = vld [vmem:[%s1815_s23 + $0x290] sm:$0xff] }
  0x94   : > { %v1440_v54 = vpop.eup %1439  ;;  %1076 = vst [vmem:[%s1925_s16 + $0x1d8] sm:$0xff] %v929_v28  ;;  %v931_v33 = vmul.f32 %v784_v7, %v2162_v40  ;;  %v786_v30 = vadd.f32 0.5, %v639_v1  ;;  %v641_v14 = vmul.f32 0.5, %v1438_v50  ;;  %1459 = verf.f32 %v358_v15 }
  0x95   : > { %v1442_v35 = vpop.eup %1441  ;;  %1077 = vst [vmem:[%s1925_s16 + $0x1e0] sm:$0xff] %v930_v8  ;;  %v932_v53 = vmul.f32 %v785_v23, %v2167_v17  ;;  %v787_v55 = vadd.f32 0.5, %v640_v43  ;;  %v642_v61 = vmul.f32 0.5, %v1440_v54  ;;  %1461 = verf.f32 %v359_v63  ;;  %v2308_v43 = vld [vmem:[%s1815_s23 + $0x2a8] sm:$0xff] }
  0x96   : > { %v1444_v34 = vpop.eup %1443  ;;  %1078 = vst [vmem:[%s1925_s16 + $0x1e8] sm:$0xff] %v931_v33  ;;  %v933_v57 = vmul.f32 %v786_v30, %v2173_v3  ;;  %v788_v58 = vadd.f32 0.5, %v641_v14  ;;  %v643_v40 = vmul.f32 0.5, %v1442_v35  ;;  %1463 = verf.f32 %v360_v16  ;;  %v2313_v14 = vld [vmem:[%s1815_s23 + $0x2b0] sm:$0xff] }
  0x97   : > { %v1446_v62 = vpop.eup %1445  ;;  %1079 = vst [vmem:[%s1925_s16 + $0x1f0] sm:$0xff] %v932_v53  ;;  %v934_v48 = vmul.f32 %v787_v55, %v2176_v10  ;;  %v789_v17 = vadd.f32 0.5, %v642_v61  ;;  %v644_v45 = vmul.f32 0.5, %v1444_v34  ;;  %1465 = verf.f32 %v361_v25  ;;  %v2292_v25 = vld [vmem:[%s1815_s23 + $0x298] sm:$0xff] }
  0x98   : > { %v1448_v4 = vpop.eup %1447  ;;  %1080 = vst [vmem:[%s1925_s16 + $0x1f8] sm:$0xff] %v933_v57  ;;  %v935_v3 = vmul.f32 %v788_v58, %v2183_v11  ;;  %v790_v5 = vadd.f32 0.5, %v643_v40  ;;  %v645_v15 = vmul.f32 0.5, %v1446_v62  ;;  %1467 = verf.f32 %v362_v6  ;;  %v2321_v40 = vld [vmem:[%s1815_s23 + $0x2b8] sm:$0xff] }
  0x99   : > { %v1450_v63 = vpop.eup %1449  ;;  %1081 = vst [vmem:[%s1925_s16 + $0x200] sm:$0xff] %v934_v48  ;;  %v936_v49 = vmul.f32 %v789_v17, %v2189_v51  ;;  %v791_v10 = vadd.f32 0.5, %v644_v45  ;;  %v646_v19 = vmul.f32 0.5, %v1448_v4  ;;  %v363_v52 = vmul.f32 0.70710677, %v2276_v59  ;;  %v2327_v4 = vld [vmem:[%s1815_s23 + $0x2c0] sm:$0xff] }
  0x9a   : > { %v1452_v16 = vpop.eup %1451  ;;  %1082 = vst [vmem:[%s1925_s16 + $0x208] sm:$0xff] %v935_v3  ;;  %v937_v20 = vmul.f32 %v790_v5, %v2192_v22  ;;  %v792_v11 = vadd.f32 0.5, %v645_v15  ;;  %v647_v21 = vmul.f32 0.5, %v1450_v63  ;;  %v364_v9 = vmul.f32 0.70710677, %v2281_v56  ;;  %v2335_v63 = vld [vmem:[%s1815_s23 + $0x2d0] sm:$0xff] }
  0x9b   : > { %v1454_v27 = vpop.eup %1453  ;;  %1083 = vst [vmem:[%s1925_s16 + $0x210] sm:$0xff] %v936_v49  ;;  %v938_v51 = vmul.f32 %v791_v10, %v2198_v26  ;;  %v793_v32 = vadd.f32 0.5, %v646_v19  ;;  %v648_v0 = vmul.f32 0.5, %v1452_v16  ;;  %1469 = verf.f32 %v363_v52  ;;  %v2341_v19 = vld [vmem:[%s1815_s23 + $0x2d8] sm:$0xff]  ;;  %v2344_v52 = vld [vmem:[%s1815_s23 + $0x2e0] sm:$0xff] }
  0x9c   : > { %v1456_v2 = vpop.eup %1455  ;;  %1084 = vst [vmem:[%s1925_s16 + $0x218] sm:$0xff] %v937_v20  ;;  %v939_v22 = vmul.f32 %v792_v11, %v2201_v37  ;;  %v794_v24 = vadd.f32 0.5, %v647_v21  ;;  %v649_v38 = vmul.f32 0.5, %v1454_v27  ;;  %1471 = verf.f32 %v364_v9  ;;  %v2351_v21 = vld [vmem:[%s1815_s23 + $0x2e8] sm:$0xff] }
  0x9d   : > { %v1458_v6 = vpop.eup %1457  ;;  %1085 = vst [vmem:[%s1925_s16 + $0x220] sm:$0xff] %v938_v51  ;;  %v940_v39 = vmul.f32 %v793_v32, %v2207_v31  ;;  %v795_v26 = vadd.f32 0.5, %v648_v0  ;;  %v650_v28 = vmul.f32 0.5, %v1456_v2  ;;  %v365_v7 = vmul.f32 0.70710677, %v2292_v25  ;;  %v2360_v0 = vld [vmem:[%s1815_s23 + $0x2f8] sm:$0xff] }
  0x9e   : > { %v1460_v1 = vpop.eup %1459  ;;  %1086 = vst [vmem:[%s1925_s16 + $0x228] sm:$0xff] %v939_v22  ;;  %v941_v50 = vmul.f32 %v794_v24, %v2213_v47  ;;  %v796_v37 = vadd.f32 0.5, %v649_v38  ;;  %v651_v8 = vmul.f32 0.5, %v1458_v6  ;;  %v366_v23 = vmul.f32 0.70710677, %v2297_v18  ;;  %v2366_v38 = vld [vmem:[%s1815_s23 + $0x300] sm:$0xff] }
  0x9f   : > { %v1462_v54 = vpop.eup %1461  ;;  %1087 = vst [vmem:[%s1925_s16 + $0x230] sm:$0xff] %v940_v39  ;;  %v942_v31 = vmul.f32 %v795_v26, %v2218_v29  ;;  %v797_v33 = vadd.f32 0.5, %v650_v28  ;;  %v652_v30 = vmul.f32 0.5, %v1460_v1  ;;  %1473 = verf.f32 %v365_v7  ;;  %v2375_v28 = vld [vmem:[%s1815_s23 + $0x310] sm:$0xff] }
  0xa0   : > { %v1464_v35 = vpop.eup %1463  ;;  %1088 = vst [vmem:[%s1925_s16 + $0x238] sm:$0xff] %v941_v50  ;;  %v943_v47 = vmul.f32 %v796_v37, %v2221_v42  ;;  %v798_v53 = vadd.f32 0.5, %v651_v8  ;;  %v653_v55 = vmul.f32 0.5, %v1462_v54  ;;  %1475 = verf.f32 %v366_v23  ;;  %v2381_v37 = vld [vmem:[%s1815_s23 + $0x318] sm:$0xff] }
  0xa1   : > { %v1466_v61 = vpop.eup %1465  ;;  %1089 = vst [vmem:[%s1925_s16 + $0x240] sm:$0xff] %v942_v31  ;;  %v944_v29 = vmul.f32 %v797_v33, %v2226_v44  ;;  %v799_v34 = vadd.f32 0.5, %v652_v30  ;;  %v654_v57 = vmul.f32 0.5, %v1464_v35  ;;  %v367_v58 = vmul.f32 0.70710677, %v2308_v43  ;;  %v2330_v44 = vld [vmem:[%s1815_s23 + $0x2c8] sm:$0xff] }
  0xa2   : > { %v1468_v62 = vpop.eup %1467  ;;  %1090 = vst [vmem:[%s1925_s16 + $0x248] sm:$0xff] %v943_v47  ;;  %v945_v42 = vmul.f32 %v798_v53, %v2229_v13  ;;  %v800_v48 = vadd.f32 0.5, %v653_v55  ;;  %v655_v17 = vmul.f32 0.5, %v1466_v61  ;;  %v368_v45 = vmul.f32 0.70710677, %v2313_v14  ;;  %v2386_v33 = vld [vmem:[%s1815_s23 + $0x320] sm:$0xff] }
  0xa3   : > { %1091 = vst [vmem:[%s1925_s16 + $0x250] sm:$0xff] %v944_v29  ;;  %v946_v3 = vmul.f32 %v799_v34, %v2235_v12  ;;  %v801_v5 = vadd.f32 0.5, %v654_v57  ;;  %v656_v15 = vmul.f32 0.5, %v1468_v62  ;;  %1477 = verf.f32 %v367_v58  ;;  %v2389_v30 = vld [vmem:[%s1815_s23 + $0x328] sm:$0xff]  ;;  %v2394_v55 = vld [vmem:[%s1815_s23 + $0x330] sm:$0xff]  ;;  %v2403_v57 = vld [vmem:[%s1815_s23 + $0x340] sm:$0xff] }
  0xa4   : > { %1092 = vst [vmem:[%s1925_s16 + $0x258] sm:$0xff] %v945_v42  ;;  %v947_v13 = vmul.f32 %v800_v48, %v2241_v36  ;;  %v802_v49 = vadd.f32 0.5, %v655_v17  ;;  %1479 = verf.f32 %v368_v45  ;;  %v369_v10 = vmul.f32 0.70710677, %v2321_v40  ;;  %v2409_v48 = vld [vmem:[%s1815_s23 + $0x348] sm:$0xff] }
  0xa5   : > { %v1470_v12 = vpop.eup %1469  ;;  %1093 = vst [vmem:[%s1925_s16 + $0x260] sm:$0xff] %v946_v3  ;;  %v948_v16 = vmul.f32 %v801_v5, %v2246_v60  ;;  %v803_v20 = vadd.f32 0.5, %v656_v15  ;;  %v370_v11 = vmul.f32 0.70710677, %v2327_v4  ;;  %v371_v36 = vmul.f32 0.70710677, %v2330_v44 }
  0xa6   : > { %v1472_v9 = vpop.eup %1471  ;;  %1094 = vst [vmem:[%s1925_s16 + $0x268] sm:$0xff] %v947_v13  ;;  %v949_v27 = vmul.f32 %v802_v49, %v2251_v41  ;;  %v657_v51 = vmul.f32 0.5, %v1470_v12  ;;  %1481 = verf.f32 %v369_v10  ;;  %v372_v32 = vmul.f32 0.70710677, %v2335_v63  ;;  %v2357_v60 = vld [vmem:[%s1815_s23 + $0x2f0] sm:$0xff]  ;;  %v2369_v41 = vld [vmem:[%s1815_s23 + $0x308] sm:$0xff] }
  0xa7   : > { %1095 = vst [vmem:[%s1925_s16 + $0x270] sm:$0xff] %v948_v16  ;;  %v950_v2 = vmul.f32 %v803_v20, %v2259_v46  ;;  %v658_v22 = vmul.f32 0.5, %v1472_v9  ;;  %1483 = verf.f32 %v370_v11  ;;  %v373_v24 = vmul.f32 0.70710677, %v2341_v19  ;;  %v2414_v15 = vld [vmem:[%s1815_s23 + $0x350] sm:$0xff]  ;;  %v2419_v12 = vld [vmem:[%s1815_s23 + $0x358] sm:$0xff] }
  0xa8   : > { %1096 = vst [vmem:[%s1925_s16 + $0x278] sm:$0xff] %v949_v27  ;;  %v804_v6 = vadd.f32 0.5, %v657_v51  ;;  %1485 = verf.f32 %v371_v36  ;;  %v374_v39 = vmul.f32 0.70710677, %v2344_v52  ;;  %v375_v26 = vmul.f32 0.70710677, %v2351_v21 }
  0xa9   : > { %v1474_v46 = vpop.eup %1473  ;;  %1097 = vst [vmem:[%s1925_s16 + $0x280] sm:$0xff] %v950_v2  ;;  %v805_v7 = vadd.f32 0.5, %v658_v22  ;;  %1487 = verf.f32 %v372_v32  ;;  %v376_v1 = vmul.f32 0.70710677, %v2357_v60  ;;  %v377_v50 = vmul.f32 0.70710677, %v2360_v0 }
  0xaa   : > { %v1476_v8 = vpop.eup %1475  ;;  %v951_v23 = vmul.f32 %v804_v6, %v2276_v59  ;;  %v659_v54 = vmul.f32 0.5, %v1474_v46  ;;  %1489 = verf.f32 %v373_v24  ;;  %v378_v31 = vmul.f32 0.70710677, %v2366_v38  ;;  %v2397_v59 = vld [vmem:[%s1815_s23 + $0x338] sm:$0xff]  ;;  %v2427_v51 = vld [vmem:[%s1815_s23 + $0x360] sm:$0xff] }
  0xab   : > { %v952_v35 = vmul.f32 %v805_v7, %v2281_v56  ;;  %v660_v47 = vmul.f32 0.5, %v1476_v8  ;;  %1491 = verf.f32 %v374_v39  ;;  %v379_v53 = vmul.f32 0.70710677, %v2369_v41 }
  0xac   : > { %1098 = vst [vmem:[%s1925_s16 + $0x288] sm:$0xff] %v951_v23  ;;  %v806_v61 = vadd.f32 0.5, %v659_v54  ;;  %1493 = verf.f32 %v375_v26  ;;  %v380_v29 = vmul.f32 0.70710677, %v2375_v28  ;;  %v381_v34 = vmul.f32 0.70710677, %v2381_v37 }
  0xad   : > { %v1478_v56 = vpop.eup %1477  ;;  %1099 = vst [vmem:[%s1925_s16 + $0x290] sm:$0xff] %v952_v35  ;;  %v807_v58 = vadd.f32 0.5, %v660_v47  ;;  %1495 = verf.f32 %v376_v1  ;;  %v382_v62 = vmul.f32 0.70710677, %v2386_v33  ;;  %v383_v42 = vmul.f32 0.70710677, %v2389_v30 }
  0xae   : > { %v1480_v17 = vpop.eup %1479  ;;  %v953_v45 = vmul.f32 %v806_v61, %v2292_v25  ;;  %v661_v3 = vmul.f32 0.5, %v1478_v56  ;;  %1497 = verf.f32 %v377_v50  ;;  %v384_v5 = vmul.f32 0.70710677, %v2394_v55 }
  0xaf   : > { %v954_v13 = vmul.f32 %v807_v58, %v2297_v18  ;;  %v662_v49 = vmul.f32 0.5, %v1480_v17  ;;  %1499 = verf.f32 %v378_v31  ;;  %v385_v10 = vmul.f32 0.70710677, %v2397_v59 }
  0xb0   : > { %v1482_v16 = vpop.eup %1481  ;;  %1100 = vst [vmem:[%s1925_s16 + $0x298] sm:$0xff] %v953_v45  ;;  %v808_v20 = vadd.f32 0.5, %v661_v3  ;;  %1501 = verf.f32 %v379_v53  ;;  %v386_v25 = vmul.f32 0.70710677, %v2403_v57  ;;  %v387_v11 = vmul.f32 0.70710677, %v2409_v48 }
  0xb1   : > { %v1484_v36 = vpop.eup %1483  ;;  %1101 = vst [vmem:[%s1925_s16 + $0x2a0] sm:$0xff] %v954_v13  ;;  %v809_v9 = vadd.f32 0.5, %v662_v49  ;;  %v663_v18 = vmul.f32 0.5, %v1482_v16  ;;  %1503 = verf.f32 %v380_v29  ;;  %v388_v27 = vmul.f32 0.70710677, %v2414_v15  ;;  %v2444_v3 = vld [vmem:[%s1815_s23 + $0x368] sm:$0xff] }
  0xb2   : > { %v1486_v32 = vpop.eup %1485  ;;  %v955_v2 = vmul.f32 %v808_v20, %v2308_v43  ;;  %v664_v22 = vmul.f32 0.5, %v1484_v36  ;;  %1505 = verf.f32 %v381_v34  ;;  %v389_v24 = vmul.f32 0.70710677, %v2419_v12 }
  0xb3   : > { %v1488_v6 = vpop.eup %1487  ;;  %v956_v39 = vmul.f32 %v809_v9, %v2313_v14  ;;  %v810_v26 = vadd.f32 0.5, %v663_v18  ;;  %v665_v46 = vmul.f32 0.5, %v1486_v32  ;;  %1507 = verf.f32 %v382_v62 }
  0xb4   : > { %v1490_v7 = vpop.eup %1489  ;;  %1102 = vst [vmem:[%s1925_s16 + $0x2a8] sm:$0xff] %v955_v2  ;;  %v811_v1 = vadd.f32 0.5, %v664_v22  ;;  %v666_v50 = vmul.f32 0.5, %v1488_v6  ;;  %1509 = verf.f32 %v383_v42  ;;  %v390_v8 = vmul.f32 0.70710677, %v2427_v51 }
  0xb5   : > { %v1492_v43 = vpop.eup %1491  ;;  %1103 = vst [vmem:[%s1925_s16 + $0x2b0] sm:$0xff] %v956_v39  ;;  %v957_v23 = vmul.f32 %v810_v26, %v2321_v40  ;;  %v812_v54 = vadd.f32 0.5, %v665_v46  ;;  %v667_v31 = vmul.f32 0.5, %v1490_v7  ;;  %1511 = verf.f32 %v384_v5  ;;  %v2465_v46 = vld [vmem:[%s1815_s23 + $0x380] sm:$0xff] }
  0xb6   : > { %v1494_v14 = vpop.eup %1493  ;;  %v958_v35 = vmul.f32 %v811_v1, %v2327_v4  ;;  %v813_v47 = vadd.f32 0.5, %v666_v50  ;;  %v668_v53 = vmul.f32 0.5, %v1492_v43  ;;  %1513 = verf.f32 %v385_v10  ;;  %v2449_v10 = vld [vmem:[%s1815_s23 + $0x370] sm:$0xff] }
  0xb7   : > { %v1496_v61 = vpop.eup %1495  ;;  %1104 = vst [vmem:[%s1925_s16 + $0x2b8] sm:$0xff] %v957_v23  ;;  %v959_v29 = vmul.f32 %v812_v54, %v2330_v44  ;;  %v814_v34 = vadd.f32 0.5, %v667_v31  ;;  %v669_v56 = vmul.f32 0.5, %v1494_v14  ;;  %1515 = verf.f32 %v386_v25 }
  0xb8   : > { %v1498_v40 = vpop.eup %1497  ;;  %1105 = vst [vmem:[%s1925_s16 + $0x2c0] sm:$0xff] %v958_v35  ;;  %v960_v58 = vmul.f32 %v813_v47, %v2335_v63  ;;  %v815_v62 = vadd.f32 0.5, %v668_v53  ;;  %v670_v4 = vmul.f32 0.5, %v1496_v61  ;;  %1517 = verf.f32 %v387_v11  ;;  %v2476_v53 = vld [vmem:[%s1815_s23 + $0x388] sm:$0xff] }
  0xb9   : > { %v1500_v42 = vpop.eup %1499  ;;  %1106 = vst [vmem:[%s1925_s16 + $0x2c8] sm:$0xff] %v959_v29  ;;  %v961_v17 = vmul.f32 %v814_v34, %v2341_v19  ;;  %v816_v45 = vadd.f32 0.5, %v669_v56  ;;  %v671_v44 = vmul.f32 0.5, %v1498_v40  ;;  %1519 = verf.f32 %v388_v27  ;;  %v2481_v56 = vld [vmem:[%s1815_s23 + $0x390] sm:$0xff] }
  0xba   : > { %v1502_v5 = vpop.eup %1501  ;;  %1107 = vst [vmem:[%s1925_s16 + $0x2d0] sm:$0xff] %v960_v58  ;;  %v962_v13 = vmul.f32 %v815_v62, %v2344_v52  ;;  %v817_v63 = vadd.f32 0.5, %v670_v4  ;;  %v672_v49 = vmul.f32 0.5, %v1500_v42  ;;  %1521 = verf.f32 %v389_v24  ;;  %v2460_v24 = vld [vmem:[%s1815_s23 + $0x378] sm:$0xff] }
  0xbb   : > { %v1504_v16 = vpop.eup %1503  ;;  %1108 = vst [vmem:[%s1925_s16 + $0x2d8] sm:$0xff] %v961_v17  ;;  %v963_v19 = vmul.f32 %v816_v45, %v2351_v21  ;;  %v818_v20 = vadd.f32 0.5, %v671_v44  ;;  %v673_v25 = vmul.f32 0.5, %v1502_v5  ;;  %1523 = verf.f32 %v390_v8  ;;  %v2489_v44 = vld [vmem:[%s1815_s23 + $0x398] sm:$0xff] }
  0xbc   : > { %v1506_v11 = vpop.eup %1505  ;;  %1109 = vst [vmem:[%s1925_s16 + $0x2e0] sm:$0xff] %v962_v13  ;;  %v964_v36 = vmul.f32 %v817_v63, %v2357_v60  ;;  %v819_v52 = vadd.f32 0.5, %v672_v49  ;;  %v674_v9 = vmul.f32 0.5, %v1504_v16  ;;  %v391_v18 = vmul.f32 0.70710677, %v2444_v3  ;;  %v2495_v16 = vld [vmem:[%s1815_s23 + $0x3a0] sm:$0xff] }
  0xbd   : > { %v1508_v27 = vpop.eup %1507  ;;  %1110 = vst [vmem:[%s1925_s16 + $0x2e8] sm:$0xff] %v963_v19  ;;  %v965_v32 = vmul.f32 %v818_v20, %v2360_v0  ;;  %v820_v21 = vadd.f32 0.5, %v673_v25  ;;  %v675_v2 = vmul.f32 0.5, %v1506_v11  ;;  %v392_v22 = vmul.f32 0.70710677, %v2449_v10  ;;  %v2503_v11 = vld [vmem:[%s1815_s23 + $0x3b0] sm:$0xff] }
  0xbe   : > { %v1510_v6 = vpop.eup %1509  ;;  %1111 = vst [vmem:[%s1925_s16 + $0x2f0] sm:$0xff] %v964_v36  ;;  %v966_v60 = vmul.f32 %v819_v52, %v2366_v38  ;;  %v821_v39 = vadd.f32 0.5, %v674_v9  ;;  %v676_v26 = vmul.f32 0.5, %v1508_v27  ;;  %1525 = verf.f32 %v391_v18  ;;  %v2509_v9 = vld [vmem:[%s1815_s23 + $0x3b8] sm:$0xff]  ;;  %v2512_v18 = vld [vmem:[%s1815_s23 + $0x3c0] sm:$0xff] }
  0xbf   : > { %v1512_v7 = vpop.eup %1511  ;;  %1112 = vst [vmem:[%s1925_s16 + $0x2f8] sm:$0xff] %v965_v32  ;;  %v967_v0 = vmul.f32 %v820_v21, %v2369_v41  ;;  %v822_v1 = vadd.f32 0.5, %v675_v2  ;;  %v677_v50 = vmul.f32 0.5, %v1510_v6  ;;  %1527 = verf.f32 %v392_v22  ;;  %v2519_v2 = vld [vmem:[%s1815_s23 + $0x3c8] sm:$0xff] }
  0xc0   : > { %v1514_v8 = vpop.eup %1513  ;;  %1113 = vst [vmem:[%s1925_s16 + $0x300] sm:$0xff] %v966_v60  ;;  %v968_v43 = vmul.f32 %v821_v39, %v2375_v28  ;;  %v823_v38 = vadd.f32 0.5, %v676_v26  ;;  %v678_v23 = vmul.f32 0.5, %v1512_v7  ;;  %v393_v54 = vmul.f32 0.70710677, %v2460_v24  ;;  %v2528_v26 = vld [vmem:[%s1815_s23 + $0x3d8] sm:$0xff] }
  0xc1   : > { %v1516_v31 = vpop.eup %1515  ;;  %1114 = vst [vmem:[%s1925_s16 + $0x308] sm:$0xff] %v967_v0  ;;  %v969_v14 = vmul.f32 %v822_v1, %v2381_v37  ;;  %v824_v41 = vadd.f32 0.5, %v677_v50  ;;  %v679_v35 = vmul.f32 0.5, %v1514_v8  ;;  %v394_v47 = vmul.f32 0.70710677, %v2465_v46  ;;  %v2534_v50 = vld [vmem:[%s1815_s23 + $0x3e0] sm:$0xff] }
  0xc2   : > { %v1518_v61 = vpop.eup %1517  ;;  %1115 = vst [vmem:[%s1925_s16 + $0x310] sm:$0xff] %v968_v43  ;;  %v970_v28 = vmul.f32 %v823_v38, %v2386_v33  ;;  %v825_v29 = vadd.f32 0.5, %v678_v23  ;;  %v680_v34 = vmul.f32 0.5, %v1516_v31  ;;  %1529 = verf.f32 %v393_v54  ;;  %v2543_v23 = vld [vmem:[%s1815_s23 + $0x3f0] sm:$0xff] }
  0xc3   : > { %v1520_v40 = vpop.eup %1519  ;;  %1116 = vst [vmem:[%s1925_s16 + $0x318] sm:$0xff] %v969_v14  ;;  %v971_v37 = vmul.f32 %v824_v41, %v2389_v30  ;;  %v826_v58 = vadd.f32 0.5, %v679_v35  ;;  %v681_v62 = vmul.f32 0.5, %v1518_v61  ;;  %1531 = verf.f32 %v394_v47  ;;  %v2549_v41 = vld [vmem:[%s1815_s23 + $0x3f8] sm:$0xff] }
  0xc4   : > { %v1522_v4 = vpop.eup %1521  ;;  %1117 = vst [vmem:[%s1925_s16 + $0x320] sm:$0xff] %v970_v28  ;;  %v972_v33 = vmul.f32 %v825_v29, %v2394_v55  ;;  %v827_v42 = vadd.f32 0.5, %v680_v34  ;;  %v682_v17 = vmul.f32 0.5, %v1520_v40  ;;  %v395_v45 = vmul.f32 0.70710677, %v2476_v53  ;;  %v2498_v55 = vld [vmem:[%s1815_s23 + $0x3a8] sm:$0xff] }
  0xc5   : > { %v1524_v5 = vpop.eup %1523  ;;  %1118 = vst [vmem:[%s1925_s16 + $0x328] sm:$0xff] %v971_v37  ;;  %v973_v30 = vmul.f32 %v826_v58, %v2397_v59  ;;  %v828_v13 = vadd.f32 0.5, %v681_v62  ;;  %v683_v63 = vmul.f32 0.5, %v1522_v4  ;;  %v396_v49 = vmul.f32 0.70710677, %v2481_v56  ;;  %v2554_v29 = vld [vmem:[%s1815_s23 + $0x400] sm:$0xff] }
  0xc6   : > { %1119 = vst [vmem:[%s1925_s16 + $0x330] sm:$0xff] %v972_v33  ;;  %v974_v19 = vmul.f32 %v827_v42, %v2403_v57  ;;  %v829_v20 = vadd.f32 0.5, %v682_v17  ;;  %v684_v25 = vmul.f32 0.5, %v1524_v5  ;;  %1533 = verf.f32 %v395_v45  ;;  %v2557_v34 = vld [vmem:[%s1815_s23 + $0x408] sm:$0xff]  ;;  %v2562_v62 = vld [vmem:[%s1815_s23 + $0x410] sm:$0xff]  ;;  %v2571_v17 = vld [vmem:[%s1815_s23 + $0x420] sm:$0xff] }
  0xc7   : > { %1120 = vst [vmem:[%s1925_s16 + $0x338] sm:$0xff] %v973_v30  ;;  %v975_v59 = vmul.f32 %v828_v13, %v2409_v48  ;;  %v830_v36 = vadd.f32 0.5, %v683_v63  ;;  %1535 = verf.f32 %v396_v49  ;;  %v397_v52 = vmul.f32 0.70710677, %v2489_v44  ;;  %v2577_v13 = vld [vmem:[%s1815_s23 + $0x428] sm:$0xff] }
  0xc8   : > { %v1526_v57 = vpop.eup %1525  ;;  %1121 = vst [vmem:[%s1925_s16 + $0x340] sm:$0xff] %v974_v19  ;;  %v976_v27 = vmul.f32 %v829_v20, %v2414_v15  ;;  %v831_v32 = vadd.f32 0.5, %v684_v25  ;;  %v398_v21 = vmul.f32 0.70710677, %v2495_v16  ;;  %v399_v48 = vmul.f32 0.70710677, %v2498_v55 }
  0xc9   : > { %v1528_v22 = vpop.eup %1527  ;;  %1122 = vst [vmem:[%s1925_s16 + $0x348] sm:$0xff] %v975_v59  ;;  %v977_v6 = vmul.f32 %v830_v36, %v2419_v12  ;;  %v685_v60 = vmul.f32 0.5, %v1526_v57  ;;  %1537 = verf.f32 %v397_v52  ;;  %v400_v39 = vmul.f32 0.70710677, %v2503_v11  ;;  %v2525_v15 = vld [vmem:[%s1815_s23 + $0x3d0] sm:$0xff]  ;;  %v2537_v12 = vld [vmem:[%s1815_s23 + $0x3e8] sm:$0xff] }
  0xca   : > { %1123 = vst [vmem:[%s1925_s16 + $0x350] sm:$0xff] %v976_v27  ;;  %v978_v7 = vmul.f32 %v831_v32, %v2427_v51  ;;  %v686_v0 = vmul.f32 0.5, %v1528_v22  ;;  %1539 = verf.f32 %v398_v21  ;;  %v401_v1 = vmul.f32 0.70710677, %v2509_v9  ;;  %v2582_v25 = vld [vmem:[%s1815_s23 + $0x430] sm:$0xff]  ;;  %v2587_v57 = vld [vmem:[%s1815_s23 + $0x438] sm:$0xff] }
  0xcb   : > { %1124 = vst [vmem:[%s1925_s16 + $0x358] sm:$0xff] %v977_v6  ;;  %v832_v8 = vadd.f32 0.5, %v685_v60  ;;  %1541 = verf.f32 %v399_v48  ;;  %v402_v43 = vmul.f32 0.70710677, %v2512_v18  ;;  %v403_v38 = vmul.f32 0.70710677, %v2519_v2 }
  0xcc   : > { %v1530_v51 = vpop.eup %1529  ;;  %1125 = vst [vmem:[%s1925_s16 + $0x360] sm:$0xff] %v978_v7  ;;  %v833_v54 = vadd.f32 0.5, %v686_v0  ;;  %1543 = verf.f32 %v400_v39  ;;  %v404_v31 = vmul.f32 0.70710677, %v2525_v15  ;;  %v405_v14 = vmul.f32 0.70710677, %v2528_v26 }
  0xcd   : > { %v1532_v35 = vpop.eup %1531  ;;  %v979_v47 = vmul.f32 %v832_v8, %v2444_v3  ;;  %v687_v61 = vmul.f32 0.5, %v1530_v51  ;;  %1545 = verf.f32 %v401_v1  ;;  %v406_v28 = vmul.f32 0.70710677, %v2534_v50  ;;  %v2565_v3 = vld [vmem:[%s1815_s23 + $0x418] sm:$0xff]  ;;  %v2595_v60 = vld [vmem:[%s1815_s23 + $0x440] sm:$0xff] }
  0xce   : > { %v980_v40 = vmul.f32 %v833_v54, %v2449_v10  ;;  %v688_v37 = vmul.f32 0.5, %v1532_v35  ;;  %1547 = verf.f32 %v402_v43  ;;  %v407_v58 = vmul.f32 0.70710677, %v2537_v12 }
  0xcf   : > { %1126 = vst [vmem:[%s1925_s16 + $0x368] sm:$0xff] %v979_v47  ;;  %v834_v4 = vadd.f32 0.5, %v687_v61  ;;  %1549 = verf.f32 %v403_v38  ;;  %v408_v33 = vmul.f32 0.70710677, %v2543_v23  ;;  %v409_v42 = vmul.f32 0.70710677, %v2549_v41 }
  0xd0   : > { %v1534_v10 = vpop.eup %1533  ;;  %1127 = vst [vmem:[%s1925_s16 + $0x370] sm:$0xff] %v980_v40  ;;  %v835_v45 = vadd.f32 0.5, %v688_v37  ;;  %1551 = verf.f32 %v404_v31  ;;  %v410_v5 = vmul.f32 0.70710677, %v2554_v29  ;;  %v411_v30 = vmul.f32 0.70710677, %v2557_v34 }
  0xd1   : > { %v1536_v63 = vpop.eup %1535  ;;  %v981_v49 = vmul.f32 %v834_v4, %v2460_v24  ;;  %v689_v19 = vmul.f32 0.5, %v1534_v10  ;;  %1553 = verf.f32 %v405_v14  ;;  %v412_v20 = vmul.f32 0.70710677, %v2562_v62 }
  0xd2   : > { %v982_v59 = vmul.f32 %v835_v45, %v2465_v46  ;;  %v690_v36 = vmul.f32 0.5, %v1536_v63  ;;  %1555 = verf.f32 %v406_v28  ;;  %v413_v52 = vmul.f32 0.70710677, %v2565_v3 }
  0xd3   : > { %v1538_v27 = vpop.eup %1537  ;;  %1128 = vst [vmem:[%s1925_s16 + $0x378] sm:$0xff] %v981_v49  ;;  %v836_v32 = vadd.f32 0.5, %v689_v19  ;;  %1557 = verf.f32 %v407_v58  ;;  %v414_v24 = vmul.f32 0.70710677, %v2571_v17  ;;  %v415_v21 = vmul.f32 0.70710677, %v2577_v13 }
  0xd4   : > { %v1540_v48 = vpop.eup %1539  ;;  %1129 = vst [vmem:[%s1925_s16 + $0x380] sm:$0xff] %v982_v59  ;;  %v837_v22 = vadd.f32 0.5, %v690_v36  ;;  %v691_v46 = vmul.f32 0.5, %v1538_v27  ;;  %1559 = verf.f32 %v408_v33  ;;  %v416_v6 = vmul.f32 0.70710677, %v2582_v25  ;;  %v2612_v19 = vld [vmem:[%s1815_s23 + $0x448] sm:$0xff] }
  0xd5   : > { %v1542_v39 = vpop.eup %1541  ;;  %v983_v7 = vmul.f32 %v836_v32, %v2476_v53  ;;  %v692_v0 = vmul.f32 0.5, %v1540_v48  ;;  %1561 = verf.f32 %v409_v42  ;;  %v417_v1 = vmul.f32 0.70710677, %v2587_v57 }
  0xd6   : > { %v1544_v8 = vpop.eup %1543  ;;  %v984_v43 = vmul.f32 %v837_v22, %v2481_v56  ;;  %v838_v38 = vadd.f32 0.5, %v691_v46  ;;  %v693_v51 = vmul.f32 0.5, %v1542_v39  ;;  %1563 = verf.f32 %v410_v5 }
  0xd7   : > { %v1546_v54 = vpop.eup %1545  ;;  %1130 = vst [vmem:[%s1925_s16 + $0x388] sm:$0xff] %v983_v7  ;;  %v839_v31 = vadd.f32 0.5, %v692_v0  ;;  %v694_v14 = vmul.f32 0.5, %v1544_v8  ;;  %1565 = verf.f32 %v411_v30  ;;  %v418_v35 = vmul.f32 0.70710677, %v2595_v60 }
  0xd8   : > { %v1548_v53 = vpop.eup %1547  ;;  %1131 = vst [vmem:[%s1925_s16 + $0x390] sm:$0xff] %v984_v43  ;;  %v985_v47 = vmul.f32 %v838_v38, %v2489_v44  ;;  %v840_v61 = vadd.f32 0.5, %v693_v51  ;;  %v695_v28 = vmul.f32 0.5, %v1546_v54  ;;  %1567 = verf.f32 %v412_v20  ;;  %v2633_v51 = vld [vmem:[%s1815_s23 + $0x460] sm:$0xff] }
  0xd9   : > { %v1550_v56 = vpop.eup %1549  ;;  %v986_v40 = vmul.f32 %v839_v31, %v2495_v16  ;;  %v841_v37 = vadd.f32 0.5, %v694_v14  ;;  %v696_v58 = vmul.f32 0.5, %v1548_v53  ;;  %1569 = verf.f32 %v413_v52  ;;  %v2617_v52 = vld [vmem:[%s1815_s23 + $0x450] sm:$0xff] }
  0xda   : > { %v1552_v4 = vpop.eup %1551  ;;  %1132 = vst [vmem:[%s1925_s16 + $0x398] sm:$0xff] %v985_v47  ;;  %v987_v33 = vmul.f32 %v840_v61, %v2498_v55  ;;  %v842_v42 = vadd.f32 0.5, %v695_v28  ;;  %v697_v10 = vmul.f32 0.5, %v1550_v56  ;;  %1571 = verf.f32 %v414_v24 }
  0xdb   : > { %v1554_v44 = vpop.eup %1553  ;;  %1133 = vst [vmem:[%s1925_s16 + $0x3a0] sm:$0xff] %v986_v40  ;;  %v988_v45 = vmul.f32 %v841_v37, %v2503_v11  ;;  %v843_v5 = vadd.f32 0.5, %v696_v58  ;;  %v698_v16 = vmul.f32 0.5, %v1552_v4  ;;  %1573 = verf.f32 %v415_v21  ;;  %v2644_v58 = vld [vmem:[%s1815_s23 + $0x468] sm:$0xff] }
  0xdc   : > { %v1556_v30 = vpop.eup %1555  ;;  %1134 = vst [vmem:[%s1925_s16 + $0x3a8] sm:$0xff] %v987_v33  ;;  %v989_v63 = vmul.f32 %v842_v42, %v2509_v9  ;;  %v844_v49 = vadd.f32 0.5, %v697_v10  ;;  %v699_v55 = vmul.f32 0.5, %v1554_v44  ;;  %1575 = verf.f32 %v416_v6  ;;  %v2649_v10 = vld [vmem:[%s1815_s23 + $0x470] sm:$0xff] }
  0xdd   : > { %v1558_v20 = vpop.eup %1557  ;;  %1135 = vst [vmem:[%s1925_s16 + $0x3b0] sm:$0xff] %v988_v45  ;;  %v990_v59 = vmul.f32 %v843_v5, %v2512_v18  ;;  %v845_v11 = vadd.f32 0.5, %v698_v16  ;;  %v700_v36 = vmul.f32 0.5, %v1556_v30  ;;  %1577 = verf.f32 %v417_v1  ;;  %v2628_v1 = vld [vmem:[%s1815_s23 + $0x458] sm:$0xff] }
  0xde   : > { %v1560_v27 = vpop.eup %1559  ;;  %1136 = vst [vmem:[%s1925_s16 + $0x3b8] sm:$0xff] %v989_v63  ;;  %v991_v9 = vmul.f32 %v844_v49, %v2519_v2  ;;  %v846_v32 = vadd.f32 0.5, %v699_v55  ;;  %v701_v24 = vmul.f32 0.5, %v1558_v20  ;;  %1579 = verf.f32 %v418_v35  ;;  %v2657_v55 = vld [vmem:[%s1815_s23 + $0x478] sm:$0xff] }
  0xdf   : > { %v1562_v21 = vpop.eup %1561  ;;  %1137 = vst [vmem:[%s1925_s16 + $0x3c0] sm:$0xff] %v990_v59  ;;  %v992_v48 = vmul.f32 %v845_v11, %v2525_v15  ;;  %v847_v18 = vadd.f32 0.5, %v700_v36  ;;  %v702_v22 = vmul.f32 0.5, %v1560_v27  ;;  %v419_v46 = vmul.f32 0.70710677, %v2612_v19  ;;  %v2663_v27 = vld [vmem:[%s1815_s23 + $0x480] sm:$0xff] }
  0xe0   : > { %v1564_v6 = vpop.eup %1563  ;;  %1138 = vst [vmem:[%s1925_s16 + $0x3c8] sm:$0xff] %v991_v9  ;;  %v993_v39 = vmul.f32 %v846_v32, %v2528_v26  ;;  %v848_v2 = vadd.f32 0.5, %v701_v24  ;;  %v703_v7 = vmul.f32 0.5, %v1562_v21  ;;  %v420_v0 = vmul.f32 0.70710677, %v2617_v52  ;;  %v2671_v21 = vld [vmem:[%s1815_s23 + $0x490] sm:$0xff] }
  0xe1   : > { %v1566_v8 = vpop.eup %1565  ;;  %1139 = vst [vmem:[%s1925_s16 + $0x3d0] sm:$0xff] %v992_v48  ;;  %v994_v15 = vmul.f32 %v847_v18, %v2534_v50  ;;  %v849_v43 = vadd.f32 0.5, %v702_v22  ;;  %v704_v38 = vmul.f32 0.5, %v1564_v6  ;;  %1581 = verf.f32 %v419_v46 }
  0xe2   : > { %v1568_v54 = vpop.eup %1567  ;;  %1140 = vst [vmem:[%s1925_s16 + $0x3d8] sm:$0xff] %v993_v39  ;;  %v995_v26 = vmul.f32 %v848_v2, %v2537_v12  ;;  %v850_v31 = vadd.f32 0.5, %v703_v7  ;;  %v705_v14 = vmul.f32 0.5, %v1566_v8  ;;  %1583 = verf.f32 %v420_v0 }
  0xe3   : > { %v1570_v35 = vpop.eup %1569  ;;  %1141 = vst [vmem:[%s1925_s16 + $0x3e0] sm:$0xff] %v994_v15  ;;  %v996_v53 = vmul.f32 %v849_v43, %v2543_v23  ;;  %v851_v50 = vadd.f32 0.5, %v704_v38  ;;  %v706_v47 = vmul.f32 0.5, %v1568_v54  ;;  %v421_v61 = vmul.f32 0.70710677, %v2628_v1 }
  0xe4   : > { %v1572_v28 = vpop.eup %1571  ;;  %1142 = vst [vmem:[%s1925_s16 + $0x3e8] sm:$0xff] %v995_v26  ;;  %v997_v56 = vmul.f32 %v850_v31, %v2549_v41  ;;  %v852_v12 = vadd.f32 0.5, %v705_v14  ;;  %v707_v40 = vmul.f32 0.5, %v1570_v35  ;;  %v422_v37 = vmul.f32 0.70710677, %v2633_v51 }
  0xe5   : > { %v1574_v4 = vpop.eup %1573  ;;  %1143 = vst [vmem:[%s1925_s16 + $0x3f0] sm:$0xff] %v996_v53  ;;  %v998_v23 = vmul.f32 %v851_v50, %v2554_v29  ;;  %v853_v33 = vadd.f32 0.5, %v706_v47  ;;  %v708_v42 = vmul.f32 0.5, %v1572_v28  ;;  %1585 = verf.f32 %v421_v61 }
  0xe6   : > { %v1576_v44 = vpop.eup %1575  ;;  %1144 = vst [vmem:[%s1925_s16 + $0x3f8] sm:$0xff] %v997_v56  ;;  %v999_v41 = vmul.f32 %v852_v12, %v2557_v34  ;;  %v854_v45 = vadd.f32 0.5, %v707_v40  ;;  %v709_v5 = vmul.f32 0.5, %v1574_v4  ;;  %1587 = verf.f32 %v422_v37 }
  0xe7   : > { %v1578_v16 = vpop.eup %1577  ;;  %1145 = vst [vmem:[%s1925_s16 + $0x400] sm:$0xff] %v998_v23  ;;  %v1000_v29 = vmul.f32 %v853_v33, %v2562_v62  ;;  %v855_v30 = vadd.f32 0.5, %v708_v42  ;;  %v710_v63 = vmul.f32 0.5, %v1576_v44  ;;  %v423_v49 = vmul.f32 0.70710677, %v2644_v58  ;;  %v2666_v62 = vld [vmem:[%s1815_s23 + $0x488] sm:$0xff] }
  0xe8   : > { %v1580_v20 = vpop.eup %1579  ;;  %1146 = vst [vmem:[%s1925_s16 + $0x408] sm:$0xff] %v999_v41  ;;  %v1001_v34 = vmul.f32 %v854_v45, %v2565_v3  ;;  %v856_v59 = vadd.f32 0.5, %v709_v5  ;;  %v711_v11 = vmul.f32 0.5, %v1578_v16  ;;  %v424_v36 = vmul.f32 0.70710677, %v2649_v10 }
  0xe9   : > { %1147 = vst [vmem:[%s1925_s16 + $0x410] sm:$0xff] %v1000_v29  ;;  %v1002_v9 = vmul.f32 %v855_v30, %v2571_v17  ;;  %v857_v32 = vadd.f32 0.5, %v710_v63  ;;  %v712_v24 = vmul.f32 0.5, %v1580_v20  ;;  %1589 = verf.f32 %v423_v49 }
  0xea   : > { %1148 = vst [vmem:[%s1925_s16 + $0x418] sm:$0xff] %v1001_v34  ;;  %v1003_v3 = vmul.f32 %v856_v59, %v2577_v13  ;;  %v858_v48 = vadd.f32 0.5, %v711_v11  ;;  %1591 = verf.f32 %v424_v36  ;;  %v425_v18 = vmul.f32 0.70710677, %v2657_v55 }
  0xeb   : > { %v1582_v22 = vpop.eup %1581  ;;  %1149 = vst [vmem:[%s1925_s16 + $0x420] sm:$0xff] %v1002_v9  ;;  %v1004_v46 = vmul.f32 %v857_v32, %v2582_v25  ;;  %v859_v17 = vadd.f32 0.5, %v712_v24  ;;  %v426_v6 = vmul.f32 0.70710677, %v2663_v27  ;;  %v427_v39 = vmul.f32 0.70710677, %v2666_v62 }
  0xec   : > { %v1584_v2 = vpop.eup %1583  ;;  %1150 = vst [vmem:[%s1925_s16 + $0x428] sm:$0xff] %v1003_v3  ;;  %v1005_v13 = vmul.f32 %v858_v48, %v2587_v57  ;;  %v713_v7 = vmul.f32 0.5, %v1582_v22  ;;  %1593 = verf.f32 %v425_v18  ;;  %v428_v0 = vmul.f32 0.70710677, %v2671_v21 }
  0xed   : > { %1151 = vst [vmem:[%s1925_s16 + $0x430] sm:$0xff] %v1004_v46  ;;  %v1006_v8 = vmul.f32 %v859_v17, %v2595_v60  ;;  %v714_v15 = vmul.f32 0.5, %v1584_v2  ;;  %1595 = verf.f32 %v426_v6 }
  0xee   : > { %1152 = vst [vmem:[%s1925_s16 + $0x438] sm:$0xff] %v1005_v13  ;;  %v860_v25 = vadd.f32 0.5, %v713_v7  ;;  %1597 = verf.f32 %v427_v39 }
  0xef   : > { %v1586_v43 = vpop.eup %1585  ;;  %1153 = vst [vmem:[%s1925_s16 + $0x440] sm:$0xff] %v1006_v8  ;;  %v861_v38 = vadd.f32 0.5, %v714_v15  ;;  %1599 = verf.f32 %v428_v0 }
  0xf0   : > { %v1588_v54 = vpop.eup %1587  ;;  %v1007_v57 = vmul.f32 %v860_v25, %v2612_v19  ;;  %v715_v26 = vmul.f32 0.5, %v1586_v43 }
  0xf1   : > { %v1008_v31 = vmul.f32 %v861_v38, %v2617_v52  ;;  %v716_v14 = vmul.f32 0.5, %v1588_v54 }
  0xf2   : > { %1154 = vst [vmem:[%s1925_s16 + $0x448] sm:$0xff] %v1007_v57  ;;  %v862_v60 = vadd.f32 0.5, %v715_v26 }
  0xf3   : > { %v1590_v35 = vpop.eup %1589  ;;  %1155 = vst [vmem:[%s1925_s16 + $0x450] sm:$0xff] %v1008_v31  ;;  %v863_v53 = vadd.f32 0.5, %v716_v14 }
  0xf4   : > { %v1592_v50 = vpop.eup %1591  ;;  %v1009_v47 = vmul.f32 %v862_v60, %v2628_v1  ;;  %v717_v61 = vmul.f32 0.5, %v1590_v35 }
  0xf5   : > { %v1010_v28 = vmul.f32 %v863_v53, %v2633_v51  ;;  %v718_v56 = vmul.f32 0.5, %v1592_v50 }
  0xf6   : > { %v1594_v12 = vpop.eup %1593  ;;  %1156 = vst [vmem:[%s1925_s16 + $0x458] sm:$0xff] %v1009_v47  ;;  %v864_v19 = vadd.f32 0.5, %v717_v61 }
  0xf7   : > { %v1596_v52 = vpop.eup %1595  ;;  %1157 = vst [vmem:[%s1925_s16 + $0x460] sm:$0xff] %v1010_v28  ;;  %v865_v40 = vadd.f32 0.5, %v718_v56  ;;  %v719_v37 = vmul.f32 0.5, %v1594_v12 }
  0xf8   : > { %v1598_v4 = vpop.eup %1597  ;;  %v1011_v23 = vmul.f32 %v864_v19, %v2644_v58  ;;  %v720_v1 = vmul.f32 0.5, %v1596_v52 }
  0xf9   : > { %v1600_v33 = vpop.eup %1599  ;;  %v1012_v51 = vmul.f32 %v865_v40, %v2649_v10  ;;  %v866_v42 = vadd.f32 0.5, %v719_v37  ;;  %v721_v44 = vmul.f32 0.5, %v1598_v4 }
  0xfa   : > { %1158 = vst [vmem:[%s1925_s16 + $0x468] sm:$0xff] %v1011_v23  ;;  %v867_v41 = vadd.f32 0.5, %v720_v1  ;;  %v722_v45 = vmul.f32 0.5, %v1600_v33 }
  0xfb   : > { %1159 = vst [vmem:[%s1925_s16 + $0x470] sm:$0xff] %v1012_v51  ;;  %v1013_v5 = vmul.f32 %v866_v42, %v2657_v55  ;;  %v868_v58 = vadd.f32 0.5, %v721_v44 }
  0xfc   : > { %v1014_v16 = vmul.f32 %v867_v41, %v2663_v27  ;;  %v869_v29 = vadd.f32 0.5, %v722_v45 }
  0xfd   : > { %1160 = vst [vmem:[%s1925_s16 + $0x478] sm:$0xff] %v1013_v5  ;;  %v1015_v10 = vmul.f32 %v868_v58, %v2666_v62 }
  0xfe   : > { %1161 = vst [vmem:[%s1925_s16 + $0x480] sm:$0xff] %v1014_v16  ;;  %v1016_v30 = vmul.f32 %v869_v29, %v2671_v21 }
  0xff   : > { %1162 = vst [vmem:[%s1925_s16 + $0x488] sm:$0xff] %v1015_v10 }
 0x100   : > { %1163 = vst [vmem:[%s1925_s16 + $0x490] sm:$0xff] %v1016_v30 }
 0x101   : > { %1644 = shalt.err (!%p1641_p3)
}
 0x102   : > { %s1645_s4 = scalar_lea.hbm %s2710_s28, 18816  ;;  %s1649_s13 = scalar_lea.hbm %s2756_s1, 75264 }
 0x103   : > { %p1646_p5 = scmp.ne.s32.totalorder %s2710_s28, %s1645_s4  ;;  %p1650_p13 = scmp.lt.u32.totalorder %s2710_s28, %s2756_s1 }
 0x104   : > { %p1651_p0 = scmp.lt.u32.totalorder %s1649_s13, %s1645_s4  ;;  %p1653_p6 = scmp.lt.u32.totalorder %s1645_s4, %s2710_s28 }
 0x105   : > { %p1647_p7 = pnand %p1646_p5, %p2764_p10 }
 0x106   : > { %p1652_p2 = por %p1651_p0, %p1650_p13 }
 0x107   : > { %p1648_p8 = pneg %p1647_p7 }
 0x108   : > { %p1654_p11 = por %p1653_p6, %p1652_p2 }
 0x10a   : > { %p1655_p12 = pnand %p1654_p11, %p1648_p8 }
 0x10c   : > { %1658 = shalt.err (!%p1655_p12)
}
 0x10d   : > { %1263 = dma.vmem_to_hbm [thread:$0]  (%p2764_p10), %s2712_s25, 18816, %s2710_s28, %s1165_s10  }
 0x10e PF: > { %p1274_p4 = scmp.ge.s32.totalorder %s1697_s9, 2  ;;  %s1191_s20 = sand.u32 1, %s1685_s6  }
 0x10f   : > { %p2765_p9 = scmp.ne.s32.totalorder %s2760_s18, 0  ;;  %s1192_s21 = scalar_lea.sflag [#allocation4], %s1191_s20 }
 0x111   : > { %p1270_p1 = pnand %p1274_p4, %p2765_p9 }
 0x113   : > { %1680 = dma.done.wait (!%p1270_p1), %s1192_s21, 18816  }
 0x114   : > { %1682 = vsyncadd (!%p1270_p1), %s1192_s21, 4294948480  ;;  %p14_p3 = scmp.ge.s32.totalorder %s1736_s12, 6   ;;  %s2766_s6 = smov %s1689_s7 }
 0x115   : > { %s2767_s7 = smov %s1693_s8  ;;  %s2768_s8 = smov %s1748_s15 }
 0x116   : > { %s2769_s9 = smov %s1736_s12  ;;  %16 = sbr.rel (!%p14_p3) target bundleno = 5 (0x5), region = 69 }
 0x11d   :  { %1197 = vsyncpa [#allocation3], 1 }
 0x11e   :  { %1199 = vsyncpa [#allocation3 + $0x1], 1 }
 0x11f   :  { %1200 = vsyncpa [#allocation4], 1 }
 0x120   :  { %1202 = vsyncpa [#allocation4 + $0x1], 1 }

</bundles_post_ra>
